<compile_context>
chip_gen: v5e
topology: v5e:2x2
jax: 0.10.0
libtpu: 0.0.40
codegen_flags: <defaults>
</compile_context>

<pallas_src>
import jax
import jax.numpy as jnp
from jax.experimental import pallas as pl
from jax.experimental.pallas import tpu as pltpu


LEAKY_SLOPE = 0.01
BN_EPS = 1e-5
LANE = 128


def _leaky_relu(x):
    return jnp.where(x > 0, x, LEAKY_SLOPE * x)


def _round_up(x, m):
    return (x + m - 1) // m * m


def _device_kind():
    try:
        return jax.devices()[0].device_kind.lower()
    except Exception:
        return ""


def _vmem_capacity_bytes():
    try:
        return int(pltpu.get_tpu_info().vmem_capacity_bytes)
    except Exception:
        return 64 << 20  # conservative (v7x per-TC VMEM)


def _default_batch_tile():
    # v6e/v7x MXUs are 2x256^2 -> a 256-row tile amortizes MXU push/drain and
    # per-grid-step overhead better; v5e's 4x128^2 MXU sees no benefit past 128.
    return 128 if "v5" in _device_kind() else 256


def critic_kernel(
    x_ref,
    w1_ref, b1_ref,
    w2_ref, b2_ref,
    w3_ref, b3_ref,
    w4_ref, b4_ref,
    w5_ref, b5_ref,
    o_ref,
):
    """Fused 5-layer MLP: (Linear[BN+bias folded] -> LeakyReLU) x4 -> head."""

    def hidden(h_bf16, w_ref, b_ref):
        # bf16 x bf16 matmul on the MXU with f32 accumulation.
        y = jnp.dot(h_bf16, w_ref[...], preferred_element_type=jnp.float32)
        y = y + b_ref[...]              # (1, H) broadcasts over the batch tile
        return _leaky_relu(y)           # f32; dropout (eval) == identity

    h = x_ref[...].astype(jnp.bfloat16)
    y = hidden(h, w1_ref, b1_ref)
    y = hidden(y.astype(jnp.bfloat16), w2_ref, b2_ref)
    y = hidden(y.astype(jnp.bfloat16), w3_ref, b3_ref)
    y = hidden(y.astype(jnp.bfloat16), w4_ref, b4_ref)   # keep f32 for the head

    # Head: (H -> 1) as a VPU multiply + lane (XLU) reduction instead of an
    # N=1 MXU matmul. w5_ref is the (1, H) row, f32.
    v = jnp.sum(y * w5_ref[...], axis=-1, keepdims=True) + b5_ref[...]
    o_ref[...] = v.astype(o_ref.dtype)


def critic_forward(x, folded, *, batch_tile=None):
    """Run the Critic forward pass with a Pallas kernel, tiled over the batch."""
    B, n_in = x.shape
    n_in_p, H = folded["w1"].shape          # w1 rows already lane-padded

    if batch_tile is None:
        batch_tile = _default_batch_tile()

    if B <= batch_tile:
        bt = B                               # whole batch in one grid step
        B_pad = B
    else:
        bt = batch_tile
        B_pad = _round_up(B, bt)             # pad ragged batch, slice at the end
    num_tiles = B_pad // bt

    # Lane-align the layer-1 K dim: zero-pad x columns (and rows, if ragged).
    if (B_pad != B) or (n_in_p != n_in):
        x_p = jnp.zeros((B_pad, n_in_p), x.dtype).at[:B, :n_in].set(x)
    else:
        x_p = x

    # Inputs in kernel-argument order.
    ordered_params = []
    for l in (1, 2, 3, 4):
        ordered_params += [folded[f"w{l}"], folded[f"b{l}"]]
    ordered_params += [folded["w5"], folded["b5"]]

    def rep(shape):
        # Replicated (constant-index) parameter block: fetched once, reused for
        # every batch tile. Single-buffered (constant index => double-buffering
        # buys nothing and would double resident weight VMEM).
        return pl.BlockSpec(shape, lambda i: (0, 0),
                            pipeline_mode=pl.Buffered(1))

    in_specs = [pl.BlockSpec((bt, n_in_p), lambda i: (i, 0))]
    for p in ordered_params:
        in_specs.append(rep(p.shape))
    out_spec = pl.BlockSpec((bt, 1), lambda i: (i, 0))

    # VMEM budget: 1x params (single-buffered) + double-buffered x/out tiles
    # + f32 activation headroom; capped below the device's physical VMEM.
    param_bytes = sum(int(p.size) * p.dtype.itemsize for p in ordered_params)
    io_bytes = 2 * (bt * n_in_p * 4 + bt * 1 * 4)
    act_bytes = 8 * bt * H * 4
    vmem_cap = max(16 << 20, _vmem_capacity_bytes() - (8 << 20))
    vmem_limit = int(
        min(vmem_cap,
            max(32 << 20, param_bytes + io_bytes + act_bytes + (4 << 20)))
    )

    # Megacore: shard batch tiles across cores whenever there are >= 2 tiles
    # (constant-index weight DMA is a one-time, overlappable per-core cost).
    semantics = ("parallel",) if num_tiles >= 2 else ("arbitrary",)

    flops = 2 * B_pad * H * (n_in_p + 3 * H) + 2 * B_pad * H
    bytes_accessed = param_bytes + B_pad * (n_in_p + 1) * 4
    cost = pl.CostEstimate(flops=flops, transcendentals=0,
                           bytes_accessed=bytes_accessed)

    out = pl.pallas_call(
        critic_kernel,
        out_shape=jax.ShapeDtypeStruct((B_pad, 1), jnp.float32),
        grid=(num_tiles,),
        in_specs=in_specs,
        out_specs=out_spec,
        compiler_params=pltpu.CompilerParams(
            dimension_semantics=semantics,
            vmem_limit_bytes=vmem_limit,
        ),
        cost_estimate=cost,
    )(x_p, *ordered_params)
    return out[:B]


def init_critic_params(key, number_of_inputs, number_of_neurons):
    """Deterministic parameter init mirroring the PyTorch module's __init__.

    Linear weights: xavier_uniform_ (stored transposed as (in, out)).
    Linear biases: PyTorch default U(-1/sqrt(fan_in), 1/sqrt(fan_in)).
    BatchNorm1d: gamma=1, beta=0, running_mean=0, running_var=1 (fresh module),
    expressed as a folded per-feature scale/shift.
    """
    dims = [number_of_inputs] + [number_of_neurons] * 4 + [1]
    params = {}
    keys = jax.random.split(key, 10)
    for l in range(5):
        fan_in, fan_out = dims[l], dims[l + 1]
        bound_w = jnp.sqrt(6.0 / (fan_in + fan_out))
        w = jax.random.uniform(
            keys[2 * l], (fan_in, fan_out), jnp.float32, -bound_w, bound_w
        )
        bound_b = 1.0 / jnp.sqrt(jnp.asarray(fan_in, jnp.float32))
        b = jax.random.uniform(
            keys[2 * l + 1], (1, fan_out), jnp.float32, -bound_b, bound_b
        )
        params[f"w{l + 1}"] = w
        params[f"b{l + 1}"] = b
        if l < 4:
            gamma = jnp.ones((1, fan_out), jnp.float32)
            beta = jnp.zeros((1, fan_out), jnp.float32)
            running_mean = jnp.zeros((1, fan_out), jnp.float32)
            running_var = jnp.ones((1, fan_out), jnp.float32)
            scale = gamma / jnp.sqrt(running_var + BN_EPS)
            shift = beta - running_mean * scale
            params[f"s{l + 1}"] = scale
            params[f"t{l + 1}"] = shift
    return params


def fold_params(params, *, lane=LANE):
    """Fold BN affine + Linear bias into weights (bf16); lane-pad layer-1 K."""
    folded = {}
    n_in = params["w1"].shape[0]
    n_in_p = _round_up(max(n_in, lane), lane)
    for l in (1, 2, 3, 4):
        w, b = params[f"w{l}"], params[f"b{l}"]
        s, t = params[f"s{l}"], params[f"t{l}"]
        w_f = w * s                                           # (in, out)
        if l == 1 and n_in_p != n_in:
            w_f = jnp.zeros((n_in_p, w.shape[1]), w.dtype).at[:n_in, :].set(w_f)
        folded[f"w{l}"] = w_f.astype(jnp.bfloat16)
        folded[f"b{l}"] = (b * s + t).astype(jnp.float32)     # (1, out)
    folded["w5"] = params["w5"].reshape(1, -1).astype(jnp.float32)   # (1, H) row
    folded["b5"] = params["b5"].astype(jnp.float32)                  # (1, 1)
    return folded


def critic_reference_f32(x, params):
    """Pure-JAX f32 reference of the original eval-mode forward pass."""
    h = x
    for l in (1, 2, 3, 4):
        h = (
            jnp.dot(h, params[f"w{l}"], precision=jax.lax.Precision.HIGHEST)
            + params[f"b{l}"]
        )
        h = h * params[f"s{l}"] + params[f"t{l}"]
        h = _leaky_relu(h)
    return (
        jnp.dot(h, params["w5"], precision=jax.lax.Precision.HIGHEST)
        + params["b5"]
    )


def critic_reference_folded(x, folded):
    """Pure-JAX reference that mimics the kernel's bf16 weight/activation math."""
    h = x
    for l in (1, 2, 3, 4):
        h_q = h.astype(jnp.bfloat16).astype(jnp.float32)
        w = folded[f"w{l}"].astype(jnp.float32)
        if l == 1:
            w = w[: h.shape[1], :]     # un-pad layer-1 rows (padding is zero)
        h = (
            jnp.dot(h_q, w, precision=jax.lax.Precision.HIGHEST)
            + folded[f"b{l}"]
        )
        h = _leaky_relu(h)
    return jnp.sum(h * folded["w5"], axis=-1, keepdims=True) + folded["b5"]


if __name__ == "__main__":
    # Small shapes consistent with the module: state+action features -> 1 value.
    B = 512            # batch: 2x 256-row tiles on v6e/v7x, 4x 128 on v5e
    N_IN = 32          # numberOfInputs (state dim + action dim)
    N_NEURONS = 128    # numberOfNeurons (scaled down from 2048 for the demo)

    key = jax.random.PRNGKey(0)
    key_params, key_x = jax.random.split(key)
    params = init_critic_params(key_params, N_IN, N_NEURONS)
    folded = fold_params(params)
    x = jax.random.normal(key_x, (B, N_IN), jnp.float32)

    v = critic_forward(x, folded)
    v = jax.block_until_ready(v)
    assert v.shape == (B, 1)

    # Strict check: same bf16-quantized weights / activation rounding as kernel.
    v_strict = critic_reference_folded(x, folded)
    assert jnp.allclose(v, v_strict, atol=2e-3, rtol=2e-3), "mismatch vs folded ref"

    # Loose check: full-f32 original module semantics (bf16 weights add ~0.4%/layer).
    v_f32 = critic_reference_f32(x, params)
    assert jnp.allclose(v, v_f32, atol=5e-2, rtol=5e-2), "mismatch vs f32 ref"

    # Ragged-batch path (rows padded to the tile, then sliced back).
    v_small = jax.block_until_ready(critic_forward(x[:3], folded))
    assert v_small.shape == (3, 1)
    assert jnp.allclose(v_small, v[:3], atol=2e-3, rtol=2e-3), "ragged-batch mismatch"

    # TODO(synk): train-mode Dropout masking and BatchNorm running-stat updates
    # are not implemented (forward here matches eval/inference mode).
    print("KERNEL_OK")
</pallas_src>

<mosaic_0001>
module attributes {stable_mosaic.version = 11 : i64} {
  func.func @critic_kernel(%arg0: i32, %arg1: memref<256x128xf32, #tpu.memory_space<vmem>>, %arg2: memref<128x128xbf16, #tpu.memory_space<vmem>>, %arg3: memref<1x128xf32, #tpu.memory_space<vmem>>, %arg4: memref<128x128xbf16, #tpu.memory_space<vmem>>, %arg5: memref<1x128xf32, #tpu.memory_space<vmem>>, %arg6: memref<128x128xbf16, #tpu.memory_space<vmem>>, %arg7: memref<1x128xf32, #tpu.memory_space<vmem>>, %arg8: memref<128x128xbf16, #tpu.memory_space<vmem>>, %arg9: memref<1x128xf32, #tpu.memory_space<vmem>>, %arg10: memref<1x128xf32, #tpu.memory_space<vmem>>, %arg11: memref<1x1xf32, #tpu.memory_space<vmem>>, %arg12: memref<256x1xf32, #tpu.memory_space<vmem>>) attributes {dimension_semantics = [#tpu.dimension_semantics<parallel>], iteration_bounds = array<i64: 2>, scalar_prefetch = 0 : i64, scratch_operands = 0 : i64, tpu.core_type = #tpu.core_type<tc>, window_params = [{transform_indices = @transform_0, window_bounds = array<i64: 256, 128>}, {pipeline_mode = #tpu.pipeline_mode<synchronous>, transform_indices = @transform_1, window_bounds = array<i64: 128, 128>}, {pipeline_mode = #tpu.pipeline_mode<synchronous>, transform_indices = @transform_2, window_bounds = array<i64: 1, 128>}, {pipeline_mode = #tpu.pipeline_mode<synchronous>, transform_indices = @transform_3, window_bounds = array<i64: 128, 128>}, {pipeline_mode = #tpu.pipeline_mode<synchronous>, transform_indices = @transform_4, window_bounds = array<i64: 1, 128>}, {pipeline_mode = #tpu.pipeline_mode<synchronous>, transform_indices = @transform_5, window_bounds = array<i64: 128, 128>}, {pipeline_mode = #tpu.pipeline_mode<synchronous>, transform_indices = @transform_6, window_bounds = array<i64: 1, 128>}, {pipeline_mode = #tpu.pipeline_mode<synchronous>, transform_indices = @transform_7, window_bounds = array<i64: 128, 128>}, {pipeline_mode = #tpu.pipeline_mode<synchronous>, transform_indices = @transform_8, window_bounds = array<i64: 1, 128>}, {pipeline_mode = #tpu.pipeline_mode<synchronous>, transform_indices = @transform_9, window_bounds = array<i64: 1, 128>}, {pipeline_mode = #tpu.pipeline_mode<synchronous>, transform_indices = @transform_10, window_bounds = array<i64: 1, 1>}, {transform_indices = @transform_11, window_bounds = array<i64: 256, 1>}]} {
    %c0 = arith.constant 0 : index
    %c0_0 = arith.constant 0 : index
    %0 = vector.load %arg1[%c0, %c0_0] : memref<256x128xf32, #tpu.memory_space<vmem>>, vector<256x128xf32>
    %1 = arith.truncf %0 : vector<256x128xf32> to vector<256x128xbf16>
    %c0_1 = arith.constant 0 : index
    %c0_2 = arith.constant 0 : index
    %2 = vector.load %arg2[%c0_1, %c0_2] : memref<128x128xbf16, #tpu.memory_space<vmem>>, vector<128x128xbf16>
    %cst = arith.constant dense<0.000000e+00> : vector<256x128xf32>
    %3 = tpu.matmul %1, %2, %cst {dimension_numbers = #tpu.dot_dimension_numbers<[1], [0], [0], [1], [0, 0, 1, 1], [], []>} : vector<256x128xbf16>, vector<128x128xbf16>, vector<256x128xf32> -> vector<256x128xf32>
    %c0_3 = arith.constant 0 : index
    %c0_4 = arith.constant 0 : index
    %4 = vector.load %arg3[%c0_3, %c0_4] : memref<1x128xf32, #tpu.memory_space<vmem>>, vector<1x128xf32>
    %5 = vector.broadcast %4 : vector<1x128xf32> to vector<256x128xf32>
    %6 = arith.addf %3, %5 : vector<256x128xf32>
    %cst_5 = arith.constant 0.000000e+00 : f32
    %7 = vector.broadcast %cst_5 : f32 to vector<256x128xf32>
    %8 = arith.cmpf ogt, %6, %7 : vector<256x128xf32>
    %cst_6 = arith.constant 0.00999999977 : f32
    %9 = vector.broadcast %cst_6 : f32 to vector<256x128xf32>
    %10 = arith.mulf %9, %6 : vector<256x128xf32>
    %11 = arith.select %8, %6, %10 : vector<256x128xi1>, vector<256x128xf32>
    %12 = arith.truncf %11 : vector<256x128xf32> to vector<256x128xbf16>
    %c0_7 = arith.constant 0 : index
    %c0_8 = arith.constant 0 : index
    %13 = vector.load %arg4[%c0_7, %c0_8] : memref<128x128xbf16, #tpu.memory_space<vmem>>, vector<128x128xbf16>
    %cst_9 = arith.constant dense<0.000000e+00> : vector<256x128xf32>
    %14 = tpu.matmul %12, %13, %cst_9 {dimension_numbers = #tpu.dot_dimension_numbers<[1], [0], [0], [1], [0, 0, 1, 1], [], []>} : vector<256x128xbf16>, vector<128x128xbf16>, vector<256x128xf32> -> vector<256x128xf32>
    %c0_10 = arith.constant 0 : index
    %c0_11 = arith.constant 0 : index
    %15 = vector.load %arg5[%c0_10, %c0_11] : memref<1x128xf32, #tpu.memory_space<vmem>>, vector<1x128xf32>
    %16 = vector.broadcast %15 : vector<1x128xf32> to vector<256x128xf32>
    %17 = arith.addf %14, %16 : vector<256x128xf32>
    %cst_12 = arith.constant 0.000000e+00 : f32
    %18 = vector.broadcast %cst_12 : f32 to vector<256x128xf32>
    %19 = arith.cmpf ogt, %17, %18 : vector<256x128xf32>
    %cst_13 = arith.constant 0.00999999977 : f32
    %20 = vector.broadcast %cst_13 : f32 to vector<256x128xf32>
    %21 = arith.mulf %20, %17 : vector<256x128xf32>
    %22 = arith.select %19, %17, %21 : vector<256x128xi1>, vector<256x128xf32>
    %23 = arith.truncf %22 : vector<256x128xf32> to vector<256x128xbf16>
    %c0_14 = arith.constant 0 : index
    %c0_15 = arith.constant 0 : index
    %24 = vector.load %arg6[%c0_14, %c0_15] : memref<128x128xbf16, #tpu.memory_space<vmem>>, vector<128x128xbf16>
    %cst_16 = arith.constant dense<0.000000e+00> : vector<256x128xf32>
    %25 = tpu.matmul %23, %24, %cst_16 {dimension_numbers = #tpu.dot_dimension_numbers<[1], [0], [0], [1], [0, 0, 1, 1], [], []>} : vector<256x128xbf16>, vector<128x128xbf16>, vector<256x128xf32> -> vector<256x128xf32>
    %c0_17 = arith.constant 0 : index
    %c0_18 = arith.constant 0 : index
    %26 = vector.load %arg7[%c0_17, %c0_18] : memref<1x128xf32, #tpu.memory_space<vmem>>, vector<1x128xf32>
    %27 = vector.broadcast %26 : vector<1x128xf32> to vector<256x128xf32>
    %28 = arith.addf %25, %27 : vector<256x128xf32>
    %cst_19 = arith.constant 0.000000e+00 : f32
    %29 = vector.broadcast %cst_19 : f32 to vector<256x128xf32>
    %30 = arith.cmpf ogt, %28, %29 : vector<256x128xf32>
    %cst_20 = arith.constant 0.00999999977 : f32
    %31 = vector.broadcast %cst_20 : f32 to vector<256x128xf32>
    %32 = arith.mulf %31, %28 : vector<256x128xf32>
    %33 = arith.select %30, %28, %32 : vector<256x128xi1>, vector<256x128xf32>
    %34 = arith.truncf %33 : vector<256x128xf32> to vector<256x128xbf16>
    %c0_21 = arith.constant 0 : index
    %c0_22 = arith.constant 0 : index
    %35 = vector.load %arg8[%c0_21, %c0_22] : memref<128x128xbf16, #tpu.memory_space<vmem>>, vector<128x128xbf16>
    %cst_23 = arith.constant dense<0.000000e+00> : vector<256x128xf32>
    %36 = tpu.matmul %34, %35, %cst_23 {dimension_numbers = #tpu.dot_dimension_numbers<[1], [0], [0], [1], [0, 0, 1, 1], [], []>} : vector<256x128xbf16>, vector<128x128xbf16>, vector<256x128xf32> -> vector<256x128xf32>
    %c0_24 = arith.constant 0 : index
    %c0_25 = arith.constant 0 : index
    %37 = vector.load %arg9[%c0_24, %c0_25] : memref<1x128xf32, #tpu.memory_space<vmem>>, vector<1x128xf32>
    %38 = vector.broadcast %37 : vector<1x128xf32> to vector<256x128xf32>
    %39 = arith.addf %36, %38 : vector<256x128xf32>
    %cst_26 = arith.constant 0.000000e+00 : f32
    %40 = vector.broadcast %cst_26 : f32 to vector<256x128xf32>
    %41 = arith.cmpf ogt, %39, %40 : vector<256x128xf32>
    %cst_27 = arith.constant 0.00999999977 : f32
    %42 = vector.broadcast %cst_27 : f32 to vector<256x128xf32>
    %43 = arith.mulf %42, %39 : vector<256x128xf32>
    %44 = arith.select %41, %39, %43 : vector<256x128xi1>, vector<256x128xf32>
    %c0_28 = arith.constant 0 : index
    %c0_29 = arith.constant 0 : index
    %45 = vector.load %arg10[%c0_28, %c0_29] : memref<1x128xf32, #tpu.memory_space<vmem>>, vector<1x128xf32>
    %46 = vector.broadcast %45 : vector<1x128xf32> to vector<256x128xf32>
    %47 = arith.mulf %44, %46 : vector<256x128xf32>
    %cst_30 = arith.constant dense<0.000000e+00> : vector<256xf32>
    %48 = vector.multi_reduction <add>, %47, %cst_30 [1] : vector<256x128xf32> to vector<256xf32>
    %49 = vector.shape_cast %48 : vector<256xf32> to vector<256x1xf32>
    %c0_31 = arith.constant 0 : index
    %c0_32 = arith.constant 0 : index
    %50 = vector.load %arg11[%c0_31, %c0_32] : memref<1x1xf32, #tpu.memory_space<vmem>>, vector<1x1xf32>
    %51 = vector.broadcast %50 : vector<1x1xf32> to vector<256x1xf32>
    %52 = arith.addf %49, %51 : vector<256x1xf32>
    %c0_33 = arith.constant 0 : index
    %c0_34 = arith.constant 0 : index
    %53 = vector.load %arg12[%c0_33, %c0_34] : memref<256x1xf32, #tpu.memory_space<vmem>>, vector<256x1xf32>
    tpu.vector_store %arg12[%c0_33, %c0_34], %52 {strides = array<i32>} : memref<256x1xf32, #tpu.memory_space<vmem>>, vector<256x1xf32>,
    return
  }
  func.func @transform_0(%arg0: i32) -> (i32, i32) {
    %c0_i32 = arith.constant 0 : i32
    %c0_i32_0 = arith.constant 0 : i32
    return %arg0, %c0_i32 : i32, i32
  }
  func.func @transform_1(%arg0: i32) -> (i32, i32) {
    %c0_i32 = arith.constant 0 : i32
    %c0_i32_0 = arith.constant 0 : i32
    %c0_i32_1 = arith.constant 0 : i32
    return %c0_i32, %c0_i32_0 : i32, i32
  }
  func.func @transform_2(%arg0: i32) -> (i32, i32) {
    %c0_i32 = arith.constant 0 : i32
    %c0_i32_0 = arith.constant 0 : i32
    %c0_i32_1 = arith.constant 0 : i32
    return %c0_i32, %c0_i32_0 : i32, i32
  }
  func.func @transform_3(%arg0: i32) -> (i32, i32) {
    %c0_i32 = arith.constant 0 : i32
    %c0_i32_0 = arith.constant 0 : i32
    %c0_i32_1 = arith.constant 0 : i32
    return %c0_i32, %c0_i32_0 : i32, i32
  }
  func.func @transform_4(%arg0: i32) -> (i32, i32) {
    %c0_i32 = arith.constant 0 : i32
    %c0_i32_0 = arith.constant 0 : i32
    %c0_i32_1 = arith.constant 0 : i32
    return %c0_i32, %c0_i32_0 : i32, i32
  }
  func.func @transform_5(%arg0: i32) -> (i32, i32) {
    %c0_i32 = arith.constant 0 : i32
    %c0_i32_0 = arith.constant 0 : i32
    %c0_i32_1 = arith.constant 0 : i32
    return %c0_i32, %c0_i32_0 : i32, i32
  }
  func.func @transform_6(%arg0: i32) -> (i32, i32) {
    %c0_i32 = arith.constant 0 : i32
    %c0_i32_0 = arith.constant 0 : i32
    %c0_i32_1 = arith.constant 0 : i32
    return %c0_i32, %c0_i32_0 : i32, i32
  }
  func.func @transform_7(%arg0: i32) -> (i32, i32) {
    %c0_i32 = arith.constant 0 : i32
    %c0_i32_0 = arith.constant 0 : i32
    %c0_i32_1 = arith.constant 0 : i32
    return %c0_i32, %c0_i32_0 : i32, i32
  }
  func.func @transform_8(%arg0: i32) -> (i32, i32) {
    %c0_i32 = arith.constant 0 : i32
    %c0_i32_0 = arith.constant 0 : i32
    %c0_i32_1 = arith.constant 0 : i32
    return %c0_i32, %c0_i32_0 : i32, i32
  }
  func.func @transform_9(%arg0: i32) -> (i32, i32) {
    %c0_i32 = arith.constant 0 : i32
    %c0_i32_0 = arith.constant 0 : i32
    %c0_i32_1 = arith.constant 0 : i32
    return %c0_i32, %c0_i32_0 : i32, i32
  }
  func.func @transform_10(%arg0: i32) -> (i32, i32) {
    %c0_i32 = arith.constant 0 : i32
    %c0_i32_0 = arith.constant 0 : i32
    %c0_i32_1 = arith.constant 0 : i32
    return %c0_i32, %c0_i32_0 : i32, i32
  }
  func.func @transform_11(%arg0: i32) -> (i32, i32) {
    %c0_i32 = arith.constant 0 : i32
    %c0_i32_0 = arith.constant 0 : i32
    return %arg0, %c0_i32 : i32, i32
  }
}

</mosaic_0001>

<bundles_post_ra>
// kernel: tpu_custom_call.1
= control target key start
LH: loop header
LB: loop body
LE: loop exit
PB: predicated region body
PF: predicated region fallthrough
CT: control target
= control target key end

     0   :  { %s2848_s0 = inlined_call_operand.hbm [shape: f32[512,128], index: 0, kind: input, shape index: {}]   ;;  %s2849_s1 = inlined_call_operand.hbm [shape: bf16[128,128], index: 1, kind: input, shape index: {}]   ;;  %s2850_s2 = inlined_call_operand.vmem [shape: f32[1,128], index: 2, kind: input, shape index: {}]   ;;  %s2851_s3 = inlined_call_operand.hbm [shape: bf16[128,128], index: 3, kind: input, shape index: {}]   ;;  %s2852_s4 = inlined_call_operand.vmem [shape: f32[1,128], index: 4, kind: input, shape index: {}]   ;;  %s2853_s5 = inlined_call_operand.hbm [shape: bf16[128,128], index: 5, kind: input, shape index: {}]   ;;  %s2854_s6 = inlined_call_operand.vmem [shape: f32[1,128], index: 6, kind: input, shape index: {}]   ;;  %s2855_s7 = inlined_call_operand.hbm [shape: bf16[128,128], index: 7, kind: input, shape index: {}]   ;;  %s2856_s8 = inlined_call_operand.vmem [shape: f32[1,128], index: 8, kind: input, shape index: {}]   ;;  %s2857_s9 = inlined_call_operand.vmem [shape: f32[1,128], index: 9, kind: input, shape index: {}]   ;;  %s2858_s10 = inlined_call_operand.<no memory space> [shape: f32[1,1], index: 10, kind: input, shape index: {}]   ;;  %s2859_s11 = inlined_call_operand.vmem [shape: f32[512,1], index: 11, kind: output, shape index: {}]  }
   0x1   :  { %2861 = sst [smem:[#allocation14_spill]] %s2849_s1  ;;  %v16_v0 = vstv %s2858_s10 }
   0x2   :  { %2862 = sst [smem:[#allocation15_spill]] %s2851_s3  ;;  %17 = vst [vmem:[#allocation2] sm:$0x1] %v16_v0 }
   0x3   :  { %2863 = sst [smem:[#allocation16_spill]] %s2853_s5 }
   0x4   :  { %18 = vsyncpa [#allocation4], 0 }
   0x5   :  { %20 = vsyncpa [#allocation4 + $0x1], 0 }
   0x6   :  { %21 = vsyncpa [#allocation6], 0 }
   0x7   :  { %22 = vsyncpa [#allocation9], 0  ;;  %s2398_s19 = smov 0   ;;  %s2400_s20 = smov 0  }
   0x8   :  { %s2402_s21 = smov 0   ;;  %s2404_s22 = smov 0  }
   0x9 LB: > { %s2860_s10 = sadd.s32 4294967295, %s2325_s22   ;;  %p48_p0 = scmp.ne.s32.totalorder %s2317_s20, %s2313_s19  ;;  %s2325_s22 = sphi %s2404_s22, %s2876_s22   ;;  %s2321_s21 = sphi %s2402_s21, %s2875_s21   ;;  %s2317_s20 = sphi %s2400_s20, %s2874_s20   ;;  %s2313_s19 = sphi %s2398_s19, %s2873_s19  }
   0xa   : > { %p2420_p1 = scmp.eq.s32.totalorder %s2860_s10, 0  ;;  %p1863_p2 = scmp.ge.s32.totalorder %s2325_s22, 1 }
   0xb   : > { %p295_p3 = scmp.lt.s32.totalorder %s2325_s22, 3  ;;  %s2866_s1 = sld [smem:[#allocation14_spill]] }
   0xc   : > { %p2428_p4 = por %p2420_p1, %p48_p0  ;;  %s2327_s29 = smov [#allocation5]  }
   0xd   : > { %p2435_p5 = pnand %p1863_p2, %p295_p3  ;;  %s308_s30 = sshll.u32 %s2327_s29, 4  ;;  %s309_s30 = int_to_ptr.vmem [resolvable:$true] %s308_s30 }
   0xe   : > { %s2869_s5 = sld [smem:[#allocation16_spill]]  ;;  %s2328_s16 = smov 64  }
   0xf   : > { %p2061_p6 = pneg %p2435_p5  ;;  %s2329_s17 = smov 4  }
  0x10   : > { %s2330_s18 = smov [#allocation8]   ;;  %s2870_s3 = sld [smem:[#allocation15_spill]] }
  0x11   : > { %s306_s27 = sshll.u32 %s2866_s1, 4  ;;  %p2443_p7 = pnand %p2061_p6, %p2420_p1  ;;  %s307_s27 = int_to_ptr.hbm [resolvable:$true] %s306_s27 }
  0x12   : > { %s342_s19 = sshll.u32 %s2330_s18, 4  ;;  %s2332_s25 = smov [#allocation10]   ;;  %s343_s19 = int_to_ptr.vmem [resolvable:$true] %s342_s19 }
  0x13   : > { %2064 = dma.hbm_to_vmem [thread:$0]  (!%p2443_p7), %s307_s27, 1024, %s309_s30, [#allocation6], %s2328_s16, %s2328_s16, %s2329_s17  }
  0x14   : > { %s340_s15 = sshll.u32 %s2869_s5, 4  ;;  %s357_s27 = sshll.u32 %s2855_s7, 4  ;;  %s341_s15 = int_to_ptr.hbm [resolvable:$true] %s340_s15  ;;  %s358_s27 = int_to_ptr.hbm [resolvable:$true] %s357_s27 }
  0x15   : > { %2070 = dma.hbm_to_vmem [thread:$0]  (!%p2443_p7), %s341_s15, 1024, %s343_s19, [#allocation9], %s2328_s16, %s2328_s16, %s2329_s17  }
  0x16   : > { %s323_s29 = sshll.u32 %s2870_s3, 4  ;;  %s2331_s30 = smov [#allocation7]   ;;  %s324_s29 = int_to_ptr.hbm [resolvable:$true] %s323_s29 }
  0x17   : > { %s325_s18 = sshll.u32 %s2331_s30, 4  ;;  %s359_s26 = sshll.u32 %s2332_s25, 4  ;;  %s326_s18 = int_to_ptr.vmem [resolvable:$true] %s325_s18  ;;  %s360_s26 = int_to_ptr.vmem [resolvable:$true] %s359_s26 }
  0x18   : > { %2067 = dma.hbm_to_vmem [thread:$0]  (!%p2443_p7), %s324_s29, 1024, %s326_s18, [#allocation6], %s2328_s16, %s2328_s16, %s2329_s17  }
  0x19   : > { %2073 = dma.hbm_to_vmem [thread:$0]  (!%p2443_p7), %s358_s27, 1024, %s360_s26, [#allocation9], %s2328_s16, %s2328_s16, %s2329_s17  }
  0x1a   : > { %s2465_s15 = sadd.s32 1, %s2325_s22   ;;  %s35_s19 = sadd.s32 1, %s2321_s21 }
  0x1b   : > { %s32_s13 = ssub.s32 %s2325_s22, %s2465_s15  ;;  %p42_p8 = scmp.ne.s32.totalorder %s2321_s21, %s2317_s20 }
  0x1c   : > { %p33_p9 = scmp.eq.s32.totalorder %s32_s13, 0  ;;  %p43_p10 = scmp.eq.s32.totalorder %s2325_s22, 0 }
  0x1d   : > { %p2082_p11 = scmp.lt.s32.totalorder %s2325_s22, 2  ;;  %s382_s14 = sand.u32 1, %s2321_s21  }
  0x1e   : > { %s2476_s30 = scalar_select %p33_p9, %s2321_s21, %s35_s19  }
  0x1f   : > { %p44_p12 = por %p43_p10, %p42_p8  ;;  %s1869_s29 = sshll.u32 %s382_s14, 8 }
  0x20   : > { %s2010_s18 = sshll.u32 %s2325_s22, 8  ;;  %s386_s17 = scalar_lea.vmem [#allocation3], %s1869_s29 }
  0x21   : > { %s391_s12 = scalar_lea.hbm %s2848_s0, %s2010_s18  ;;  %s394_s27 = sshll.u32 %s386_s17, 4  ;;  %s395_s27 = int_to_ptr.vmem [resolvable:$true] %s394_s27 }
  0x22   : > { %s392_s16 = sshll.u32 %s391_s12, 4  ;;  %p2482_p13 = pnand %p2082_p11, %p44_p12  ;;  %s393_s16 = int_to_ptr.hbm [resolvable:$true] %s392_s16 }
  0x23   : > { %s383_s13 = scalar_lea.sflag [#allocation4], %s382_s14  ;;  %s2253_s19 = sshra.s32 %s393_s16, 4  ;;  %s2254_s19 = int_to_ptr.hbm [resolvable:$true] %s2253_s19 }
  0x24   : > { %s2255_s1 = scalar_lea.hbm %s2254_s19, 256  ;;  %p2257_p2 = pneg %p2482_p13 }
  0x25   : > { %p2256_p0 = scmp.ne.s32.totalorder %s2254_s19, %s2255_s1  ;;  %s2260_s29 = scalar_lea.hbm %s2848_s0, 512 }
  0x26   : > { %p2261_p7 = scmp.lt.s32.totalorder %s2254_s19, %s2848_s0  ;;  %p2262_p8 = scmp.lt.s32.totalorder %s2260_s29, %s2255_s1 }
  0x27   : > { %p2258_p3 = pnand %p2257_p2, %p2256_p0 }
  0x28   : > { %p2263_p9 = por %p2262_p8, %p2261_p7 }
  0x29   : > { %p2259_p6 = pneg %p2258_p3 }
  0x2b   : > { %p2264_p10 = pnand %p2263_p9, %p2259_p6 }
  0x2d   : > { %2267 = shalt.err (!%p2264_p10)
}
  0x2e   : > { %s2333_s14 = smov 128   ;;  %s2334_s17 = smov 8  }
  0x2f   : > { %2077 = dma.hbm_to_vmem [thread:$0]  (!%p2482_p13), %s393_s16, 4096, %s395_s27, %s383_s13, %s2333_s14, %s2333_s14, %s2334_s17  }
  0x30   : > { %406 = sbr.rel (%p2435_p5) target bundleno = 1025 (0x401), region = 64  ;;  %s408_s10 = sand.u32 (!%p2435_p5), 1, %s2317_s20  }
  0x31   : > { %s1873_s18 = sshll.u32 (!%p2435_p5), %s408_s10, 8  ;;  %s409_s3 = scalar_lea.sflag (!%p2435_p5), [#allocation4], %s408_s10 }
  0x32   : > { %s2499_s5 = scalar_lea.vmem (!%p2435_p5), [#allocation3], %s1873_s18 }
  0x35   : > { %2300 = dma.done.wait (%p2428_p4), %s409_s3, 4096  }
  0x36   : > { %2302 = vsyncadd (%p2428_p4), %s409_s3, 4294963200 }
  0x37   : > { %2304 = dma.done.wait (%p2420_p1), [#allocation6], 2048  }
  0x38   : > { %2306 = vsyncadd (%p2420_p1), [#allocation6], 4294965248 }
  0x39   : > { %2308 = dma.done.wait (%p2420_p1), [#allocation9], 2048  }
  0x3a   : > { %2310 = vsyncadd (%p2420_p1), [#allocation9], 4294965248  ;;  %v2018_v1 = vld [vmem:[#allocation5 + $0x38] sm:$0xff]  ;;  %v2017_v2 = vld [vmem:[#allocation5 + $0x30] sm:$0xff]  ;;  %s2872_s19 = sadd.s32 4294967295, %s2325_s22  }
  0x3b   : > { %595 = vmatpush.bf16.msra.mxu0 %v2018_v1  ;;  %v2016_v3 = vld [vmem:[#allocation5 + $0x28] sm:$0xff]  ;;  %v2015_v4 = vld [vmem:[#allocation5 + $0x20] sm:$0xff]  ;;  %v2014_v5 = vld [vmem:[#allocation5 + $0x18] sm:$0xff]  ;;  %s1878_s29 = sshll.u32 %s2872_s19, 5 }
  0x3c   : > { %v2013_v6 = vld [vmem:[#allocation5 + $0x10] sm:$0xff]  ;;  %v2012_v7 = vld [vmem:[#allocation5 + $0x8] sm:$0xff]  ;;  %v2011_v8 = vld [vmem:[#allocation5] sm:$0xff]  ;;  %p474_p1 = scmp.lt.s32.totalorder %s1878_s29, 63 }
  0x3d   : > { %v479_v9 = vld [vmem:[%s2499_s5] sm:$0xff]  ;;  %v480_v10 = vld [vmem:[%s2499_s5 + $0x8] sm:$0xff]  ;;  %v481_v12 = vld [vmem:[%s2499_s5 + $0x10] sm:$0xff] }
  0x3e   : > { %v511_v11 = vpack.c.bf16 %v480_v10, %v479_v9  ;;  %v482_v13 = vld [vmem:[%s2499_s5 + $0x18] sm:$0xff]  ;;  %v483_v15 = vld [vmem:[%s2499_s5 + $0x20] sm:$0xff]  ;;  %v484_v16 = vld [vmem:[%s2499_s5 + $0x28] sm:$0xff]  ;;  %s2878_s29 = smov (!%p474_p1, %s1878_s29), 63 }
  0x3f   : > { %596 = vmatpush.bf16.msra.mxu0 %v2017_v2  ;;  %v512_v14 = vpack.c.bf16 %v482_v13, %v481_v12  ;;  %v513_v17 = vpack.c.bf16 %v484_v16, %v483_v15  ;;  %v485_v18 = vld [vmem:[%s2499_s5 + $0x30] sm:$0xff]  ;;  %v486_v19 = vld [vmem:[%s2499_s5 + $0x38] sm:$0xff]  ;;  %v487_v21 = vld [vmem:[%s2499_s5 + $0x40] sm:$0xff]  ;;  %s1879_s25 = sshll.u32 %s2878_s29, 3 }
  0x40   : > { %v514_v20 = vpack.c.bf16 %v486_v19, %v485_v18  ;;  %v488_v22 = vld [vmem:[%s2499_s5 + $0x48] sm:$0xff]  ;;  %v2026_v24 = vld [vmem:[#allocation7 + $0x38] sm:$0xff]  ;;  %v489_v25 = vld [vmem:[%s2499_s5 + $0x50] sm:$0xff]  ;;  %s2704_s14 = scalar_lea.vmem %s2859_s11, %s1879_s25 }
  0x41   : > { %v515_v23 = vpack.c.bf16 %v488_v22, %v487_v21  ;;  %864 = vmatpush.bf16.msra.mxu1 %v2026_v24  ;;  %v490_v26 = vld [vmem:[%s2499_s5 + $0x58] sm:$0xff]  ;;  %v2025_v28 = vld [vmem:[#allocation7 + $0x30] sm:$0xff]  ;;  %v2024_v29 = vld [vmem:[#allocation7 + $0x28] sm:$0xff] }
  0x42   : > { %v516_v27 = vpack.c.bf16 %v490_v26, %v489_v25  ;;  %v2023_v30 = vld [vmem:[#allocation7 + $0x20] sm:$0xff]  ;;  %v492_v32 = vld [vmem:[%s2499_s5 + $0x68] sm:$0xff]  ;;  %v2022_v34 = vld [vmem:[#allocation7 + $0x18] sm:$0xff] }
  0x43   : > { %597 = vmatpush.bf16.msra.mxu0 %v2016_v3  ;;  %v491_v31 = vld [vmem:[%s2499_s5 + $0x60] sm:$0xff]  ;;  %v2021_v35 = vld [vmem:[#allocation7 + $0x10] sm:$0xff]  ;;  %v2020_v36 = vld [vmem:[#allocation7 + $0x8] sm:$0xff] }
  0x44   : > { %v517_v33 = vpack.c.bf16 %v492_v32, %v491_v31  ;;  %v2019_v37 = vld [vmem:[#allocation7] sm:$0xff]  ;;  %v493_v38 = vld [vmem:[%s2499_s5 + $0x70] sm:$0xff]  ;;  %v494_v39 = vld [vmem:[%s2499_s5 + $0x78] sm:$0xff] }
  0x45   : > { %865 = vmatpush.bf16.msra.mxu1 %v2025_v28  ;;  %v518_v40 = vpack.c.bf16 %v494_v39, %v493_v38  ;;  %v495_v41 = vld [vmem:[%s2499_s5 + $0x80] sm:$0xff]  ;;  %v496_v42 = vld [vmem:[%s2499_s5 + $0x88] sm:$0xff]  ;;  %v2534_v45 = vld [vmem:[%s2850_s2] ss:$0 sm:$0xff] }
  0x46   : > { %v519_v43 = vpack.c.bf16 %v496_v42, %v495_v41  ;;  %v497_v51 = vld [vmem:[%s2499_s5 + $0x90] sm:$0xff]  ;;  %v498_v52 = vld [vmem:[%s2499_s5 + $0x98] sm:$0xff]  ;;  %v499_v63 = vld [vmem:[%s2499_s5 + $0xa0] sm:$0xff] }
  0x47   : > { %598 = vmatpush.bf16.msra.mxu0 %v2015_v4  ;;  %v520_v56 = vpack.c.bf16 %v498_v52, %v497_v51  ;;  %v500_v0 = vld [vmem:[%s2499_s5 + $0xa8] sm:$0xff]  ;;  %v502_v12 = vld [vmem:[%s2499_s5 + $0xb8] sm:$0xff] }
  0x48   : > { %v521_v4 = vpack.c.bf16 %v500_v0, %v499_v63  ;;  %v504_v24 = vld [vmem:[%s2499_s5 + $0xc8] sm:$0xff]  ;;  %v509_v0 = vld [vmem:[%s2499_s5 + $0xf0] sm:$0xff] }
  0x49   : > { %866 = vmatpush.bf16.msra.mxu1 %v2024_v29 }
  0x4b   : > { %599 = vmatpush.bf16.msra.mxu0 %v2014_v5 }
  0x4d   : > { %867 = vmatpush.bf16.msra.mxu1 %v2023_v30 }
  0x4f   : > { %600 = vmatpush.bf16.msra.mxu0 %v2013_v6 }
  0x51   : > { %868 = vmatpush.bf16.msra.mxu1 %v2022_v34 }
  0x53   : > { %601 = vmatpush.bf16.msra.mxu0 %v2012_v7 }
  0x55   : > { %869 = vmatpush.bf16.msra.mxu1 %v2021_v35  ;;  %v505_v35 = vld [vmem:[%s2499_s5 + $0xd0] sm:$0xff] }
  0x57   : > { %602 = vmatpush.bf16.msra.mxu0 %v2011_v8 }
  0x59   : > { %870 = vmatpush.bf16.msra.mxu1 %v2020_v36  ;;  %v506_v36 = vld [vmem:[%s2499_s5 + $0xd8] sm:$0xff] }
  0x5a   : > { %603 = vmatmul.bf16.vlgmr.msra.gmra.mxu0 %v511_v11  ;;  %v501_v11 = vld [vmem:[%s2499_s5 + $0xb0] sm:$0xff] }
  0x5b   : > { %v522_v16 = vpack.c.bf16 %v502_v12, %v501_v11  ;;  %v2027_v12 = vld [vmem:[#allocation8] sm:$0xff] }
  0x5d   : > { %871 = vmatpush.bf16.msra.mxu1 %v2019_v37 }
  0x6a   : > { %608 = vmatmul.bf16.gmra.mxu0 %v512_v14 }
  0x7a   : > { %613 = vmatmul.bf16.gmra.mxu0 %v513_v17 }
  0x8a   : > { %618 = vmatmul.bf16.gmra.mxu0 %v514_v20 }
  0x9a   : > { %623 = vmatmul.bf16.gmra.mxu0 %v515_v23  ;;  %v503_v23 = vld [vmem:[%s2499_s5 + $0xc0] sm:$0xff] }
  0x9b   : > { %v523_v28 = vpack.c.bf16 %v504_v24, %v503_v23 }
  0xaa   : > { %628 = vmatmul.bf16.gmra.mxu0 %v516_v27 }
  0xba   : > { %633 = vmatmul.bf16.gmra.mxu0 %v517_v33 }
  0xca   : > { %638 = vmatmul.bf16.gmra.mxu0 %v518_v40  ;;  %v524_v40 = vpack.c.bf16 %v506_v36, %v505_v35 }
  0xd7   : > { %v604_v44 = vpop.f32.mrf.mxu0 }
  0xd8   : > { %v605_v46 = vadd.f32 %v2534_v45, %v604_v44 }
  0xda   : > { %643 = vmatmul.bf16.gmra.mxu0 %v519_v43  ;;  %v716_v48 = vmul.f32 0.01, %v605_v46  ;;  %vm684_vm0 = vcmp.gt.f32.partialorder %v605_v46, 0.0 }
  0xdc   : > { %v748_v53 = vsel %vm684_vm0, %v605_v46, %v716_v48  ;;  %v2034_v48 = vld [vmem:[#allocation8 + $0x38] sm:$0xff] }
  0xdd   : > { %1133 = vmatpush.bf16.msra.mxu2 %v2034_v48 }
  0xdf   : > { %v606_v47 = vpop.f32.mrf.mxu0 }
  0xe0   : > { %v607_v49 = vadd.f32 %v2534_v45, %v606_v47 }
  0xe2   : > { %v717_v50 = vmul.f32 0.01, %v607_v49  ;;  %vm685_vm1 = vcmp.gt.f32.partialorder %v607_v49, 0.0 }
  0xe4   : > { %v749_v54 = vsel %vm685_vm1, %v607_v49, %v717_v50  ;;  %v507_v49 = vld [vmem:[%s2499_s5 + $0xe0] sm:$0xff]  ;;  %v508_v50 = vld [vmem:[%s2499_s5 + $0xe8] sm:$0xff] }
  0xe5   : > { %v780_v55 = vpack.c.bf16 %v749_v54, %v748_v53  ;;  %v525_v54 = vpack.c.bf16 %v508_v50, %v507_v49 }
  0xe7   : > { %v609_v57 = vpop.f32.mrf.mxu0  ;;  %872 = vmatmul.bf16.vlgmr.msra.gmra.mxu1 %v780_v55 }
  0xe8   : > { %v610_v58 = vadd.f32 %v2534_v45, %v609_v57  ;;  %v2032_v57 = vld [vmem:[#allocation8 + $0x28] sm:$0xff] }
  0xea   : > { %648 = vmatmul.bf16.gmra.mxu0 %v520_v56  ;;  %v718_v60 = vmul.f32 0.01, %v610_v58  ;;  %vm686_vm2 = vcmp.gt.f32.partialorder %v610_v58, 0.0  ;;  %v2033_v56 = vld [vmem:[#allocation8 + $0x30] sm:$0xff] }
  0xeb   : > { %1134 = vmatpush.bf16.msra.mxu2 %v2033_v56 }
  0xec   : > { %v750_v1 = vsel %vm686_vm2, %v610_v58, %v718_v60  ;;  %v2031_v60 = vld [vmem:[#allocation8 + $0x20] sm:$0xff] }
  0xef   : > { %v611_v59 = vpop.f32.mrf.mxu0  ;;  %1135 = vmatpush.bf16.msra.mxu2 %v2032_v57 }
  0xf0   : > { %v612_v61 = vadd.f32 %v2534_v45, %v611_v59 }
  0xf2   : > { %v719_v62 = vmul.f32 0.01, %v612_v61  ;;  %vm687_vm3 = vcmp.gt.f32.partialorder %v612_v61, 0.0 }
  0xf3   : > { %1136 = vmatpush.bf16.msra.mxu2 %v2031_v60 }
  0xf4   : > { %v751_v2 = vsel %vm687_vm3, %v612_v61, %v719_v62 }
  0xf5   : > { %v781_v3 = vpack.c.bf16 %v751_v2, %v750_v1  ;;  %v510_v1 = vld [vmem:[%s2499_s5 + $0xf8] sm:$0xff] }
  0xf6   : > { %v2030_v2 = vld [vmem:[#allocation8 + $0x18] sm:$0xff] }
  0xf7   : > { %v614_v5 = vpop.f32.mrf.mxu0  ;;  %877 = vmatmul.bf16.gmra.mxu1 %v781_v3  ;;  %1137 = vmatpush.bf16.msra.mxu2 %v2030_v2 }
  0xf8   : > { %v615_v6 = vadd.f32 %v2534_v45, %v614_v5 }
  0xfa   : > { %653 = vmatmul.bf16.gmra.mxu0 %v521_v4  ;;  %v720_v8 = vmul.f32 0.01, %v615_v6  ;;  %vm688_vm4 = vcmp.gt.f32.partialorder %v615_v6, 0.0 }
  0xfc   : > { %v752_v13 = vsel %vm688_vm4, %v615_v6, %v720_v8  ;;  %v526_v6 = vpack.c.bf16 %v510_v1, %v509_v0  ;;  %v2029_v8 = vld [vmem:[#allocation8 + $0x10] sm:$0xff] }
  0xfd   : > { %1138 = vmatpush.bf16.msra.mxu2 %v2029_v8 }
  0xff   : > { %v616_v7 = vpop.f32.mrf.mxu0 }
 0x100   : > { %v617_v9 = vadd.f32 %v2534_v45, %v616_v7 }
 0x102   : > { %v721_v10 = vmul.f32 0.01, %v617_v9  ;;  %vm689_vm5 = vcmp.gt.f32.partialorder %v617_v9, 0.0 }
 0x104   : > { %v753_v14 = vsel %vm689_vm5, %v617_v9, %v721_v10  ;;  %v2028_v9 = vld [vmem:[#allocation8 + $0x8] sm:$0xff] }
 0x105   : > { %v782_v15 = vpack.c.bf16 %v753_v14, %v752_v13  ;;  %1139 = vmatpush.bf16.msra.mxu2 %v2028_v9 }
 0x107   : > { %v619_v17 = vpop.f32.mrf.mxu0  ;;  %882 = vmatmul.bf16.gmra.mxu1 %v782_v15 }
 0x108   : > { %v620_v18 = vadd.f32 %v2534_v45, %v619_v17 }
 0x109   : > { %1140 = vmatpush.bf16.msra.mxu2 %v2027_v12 }
 0x10a   : > { %658 = vmatmul.bf16.gmra.mxu0 %v522_v16  ;;  %v722_v20 = vmul.f32 0.01, %v620_v18  ;;  %vm690_vm6 = vcmp.gt.f32.partialorder %v620_v18, 0.0 }
 0x10c   : > { %v754_v25 = vsel %vm690_vm6, %v620_v18, %v722_v20 }
 0x10f   : > { %v621_v19 = vpop.f32.mrf.mxu0 }
 0x110   : > { %v622_v21 = vadd.f32 %v2534_v45, %v621_v19 }
 0x112   : > { %v723_v22 = vmul.f32 0.01, %v622_v21  ;;  %vm691_vm7 = vcmp.gt.f32.partialorder %v622_v21, 0.0 }
 0x114   : > { %v755_v26 = vsel %vm691_vm7, %v622_v21, %v723_v22 }
 0x115   : > { %v783_v27 = vpack.c.bf16 %v755_v26, %v754_v25 }
 0x117   : > { %v624_v29 = vpop.f32.mrf.mxu0  ;;  %887 = vmatmul.bf16.gmra.mxu1 %v783_v27 }
 0x118   : > { %v625_v30 = vadd.f32 %v2534_v45, %v624_v29 }
 0x11a   : > { %663 = vmatmul.bf16.gmra.mxu0 %v523_v28  ;;  %v724_v32 = vmul.f32 0.01, %v625_v30  ;;  %vm692_vm8 = vcmp.gt.f32.partialorder %v625_v30, 0.0  ;;  %v2571_v28 = vld [vmem:[%s2852_s4] ss:$0 sm:$0xff] }
 0x11c   : > { %v756_v37 = vsel %vm692_vm8, %v625_v30, %v724_v32 }
 0x11f   : > { %v626_v31 = vpop.f32.mrf.mxu0 }
 0x120   : > { %v627_v33 = vadd.f32 %v2534_v45, %v626_v31 }
 0x122   : > { %v725_v34 = vmul.f32 0.01, %v627_v33  ;;  %vm693_vm9 = vcmp.gt.f32.partialorder %v627_v33, 0.0 }
 0x124   : > { %v757_v38 = vsel %vm693_vm9, %v627_v33, %v725_v34 }
 0x125   : > { %v784_v39 = vpack.c.bf16 %v757_v38, %v756_v37 }
 0x127   : > { %v629_v41 = vpop.f32.mrf.mxu0  ;;  %892 = vmatmul.bf16.gmra.mxu1 %v784_v39 }
 0x128   : > { %v630_v42 = vadd.f32 %v2534_v45, %v629_v41 }
 0x12a   : > { %668 = vmatmul.bf16.gmra.mxu0 %v524_v40  ;;  %v726_v44 = vmul.f32 0.01, %v630_v42  ;;  %vm694_vm10 = vcmp.gt.f32.partialorder %v630_v42, 0.0 }
 0x12c   : > { %v758_v51 = vsel %vm694_vm10, %v630_v42, %v726_v44 }
 0x12f   : > { %v631_v43 = vpop.f32.mrf.mxu0 }
 0x130   : > { %v632_v46 = vadd.f32 %v2534_v45, %v631_v43 }
 0x132   : > { %v727_v47 = vmul.f32 0.01, %v632_v46  ;;  %vm695_vm11 = vcmp.gt.f32.partialorder %v632_v46, 0.0 }
 0x134   : > { %v759_v52 = vsel %vm695_vm11, %v632_v46, %v727_v47 }
 0x135   : > { %v785_v53 = vpack.c.bf16 %v759_v52, %v758_v51 }
 0x137   : > { %v634_v55 = vpop.f32.mrf.mxu0  ;;  %897 = vmatmul.bf16.gmra.mxu1 %v785_v53 }
 0x138   : > { %v635_v58 = vadd.f32 %v2534_v45, %v634_v55 }
 0x13a   : > { %673 = vmatmul.bf16.gmra.mxu0 %v525_v54  ;;  %v728_v61 = vmul.f32 0.01, %v635_v58  ;;  %vm696_vm12 = vcmp.gt.f32.partialorder %v635_v58, 0.0 }
 0x13c   : > { %v760_v3 = vsel %vm696_vm12, %v635_v58, %v728_v61 }
 0x13f   : > { %v636_v59 = vpop.f32.mrf.mxu0 }
 0x140   : > { %v637_v62 = vadd.f32 %v2534_v45, %v636_v59 }
 0x142   : > { %v729_v63 = vmul.f32 0.01, %v637_v62  ;;  %vm697_vm13 = vcmp.gt.f32.partialorder %v637_v62, 0.0 }
 0x144   : > { %v761_v4 = vsel %vm697_vm13, %v637_v62, %v729_v63 }
 0x145   : > { %v786_v5 = vpack.c.bf16 %v761_v4, %v760_v3 }
 0x147   : > { %v639_v7 = vpop.f32.mrf.mxu0  ;;  %902 = vmatmul.bf16.gmra.mxu1 %v786_v5 }
 0x148   : > { %v640_v10 = vadd.f32 %v2534_v45, %v639_v7 }
 0x14a   : > { %678 = vmatmul.bf16.gmra.mxu0 %v526_v6  ;;  %v730_v13 = vmul.f32 0.01, %v640_v10  ;;  %vm698_vm14 = vcmp.gt.f32.partialorder %v640_v10, 0.0 }
 0x14c   : > { %v762_v16 = vsel %vm698_vm14, %v640_v10, %v730_v13 }
 0x14f   : > { %v641_v11 = vpop.f32.mrf.mxu0 }
 0x150   : > { %v642_v14 = vadd.f32 %v2534_v45, %v641_v11 }
 0x152   : > { %v731_v15 = vmul.f32 0.01, %v642_v14  ;;  %vm699_vm15 = vcmp.gt.f32.partialorder %v642_v14, 0.0 }
 0x154   : > { %v763_v17 = vsel %vm699_vm15, %v642_v14, %v731_v15 }
 0x155   : > { %v787_v18 = vpack.c.bf16 %v763_v17, %v762_v16 }
 0x157   : > { %v644_v19 = vpop.f32.mrf.mxu0  ;;  %907 = vmatmul.bf16.gmra.mxu1 %v787_v18 }
 0x158   : > { %v645_v20 = vadd.f32 %v2534_v45, %v644_v19 }
 0x15a   : > { %v732_v22 = vmul.f32 0.01, %v645_v20  ;;  %vm700_vm0 = vcmp.gt.f32.partialorder %v645_v20, 0.0 }
 0x15c   : > { %v764_v26 = vsel %vm700_vm0, %v645_v20, %v732_v22 }
 0x15f   : > { %v646_v21 = vpop.f32.mrf.mxu0 }
 0x160   : > { %v647_v23 = vadd.f32 %v2534_v45, %v646_v21 }
 0x162   : > { %v733_v24 = vmul.f32 0.01, %v647_v23  ;;  %vm701_vm1 = vcmp.gt.f32.partialorder %v647_v23, 0.0 }
 0x164   : > { %v873_v25 = vpop.f32.mrf.mxu1  ;;  %v765_v27 = vsel %vm701_vm1, %v647_v23, %v733_v24 }
 0x165   : > { %v788_v29 = vpack.c.bf16 %v765_v27, %v764_v26  ;;  %v874_v31 = vadd.f32 %v2571_v28, %v873_v25 }
 0x167   : > { %v649_v30 = vpop.f32.mrf.mxu0  ;;  %912 = vmatmul.bf16.gmra.mxu1 %v788_v29  ;;  %v985_v34 = vmul.f32 0.01, %v874_v31  ;;  %vm953_vm2 = vcmp.gt.f32.partialorder %v874_v31, 0.0 }
 0x168   : > { %v650_v32 = vadd.f32 %v2534_v45, %v649_v30 }
 0x169   : > { %v1017_v40 = vsel %vm953_vm2, %v874_v31, %v985_v34 }
 0x16a   : > { %v734_v38 = vmul.f32 0.01, %v650_v32  ;;  %vm702_vm4 = vcmp.gt.f32.partialorder %v650_v32, 0.0 }
 0x16c   : > { %v875_v33 = vpop.f32.mrf.mxu1  ;;  %v766_v46 = vsel %vm702_vm4, %v650_v32, %v734_v38 }
 0x16d   : > { %v876_v35 = vadd.f32 %v2571_v28, %v875_v33 }
 0x16f   : > { %v986_v36 = vmul.f32 0.01, %v876_v35  ;;  %v651_v37 = vpop.f32.mrf.mxu0  ;;  %vm954_vm3 = vcmp.gt.f32.partialorder %v876_v35, 0.0 }
 0x170   : > { %v652_v39 = vadd.f32 %v2534_v45, %v651_v37 }
 0x171   : > { %v1018_v41 = vsel %vm954_vm3, %v876_v35, %v986_v36 }
 0x172   : > { %v735_v42 = vmul.f32 0.01, %v652_v39  ;;  %v1049_v43 = vpack.c.bf16 %v1018_v41, %v1017_v40  ;;  %vm703_vm5 = vcmp.gt.f32.partialorder %v652_v39, 0.0 }
 0x174   : > { %v878_v44 = vpop.f32.mrf.mxu1  ;;  %1141 = vmatmul.bf16.vlgmr.msra.gmra.mxu2 %v1049_v43  ;;  %v767_v47 = vsel %vm703_vm5, %v652_v39, %v735_v42 }
 0x175   : > { %v789_v48 = vpack.c.bf16 %v767_v47, %v766_v46  ;;  %v879_v50 = vadd.f32 %v2571_v28, %v878_v44 }
 0x177   : > { %v654_v49 = vpop.f32.mrf.mxu0  ;;  %917 = vmatmul.bf16.gmra.mxu1 %v789_v48  ;;  %v987_v53 = vmul.f32 0.01, %v879_v50  ;;  %vm955_vm6 = vcmp.gt.f32.partialorder %v879_v50, 0.0 }
 0x178   : > { %v655_v51 = vadd.f32 %v2534_v45, %v654_v49 }
 0x179   : > { %v1019_v59 = vsel %vm955_vm6, %v879_v50, %v987_v53 }
 0x17a   : > { %v736_v57 = vmul.f32 0.01, %v655_v51  ;;  %vm704_vm8 = vcmp.gt.f32.partialorder %v655_v51, 0.0 }
 0x17c   : > { %v880_v52 = vpop.f32.mrf.mxu1  ;;  %v768_v0 = vsel %vm704_vm8, %v655_v51, %v736_v57 }
 0x17d   : > { %v881_v54 = vadd.f32 %v2571_v28, %v880_v52 }
 0x17f   : > { %v988_v55 = vmul.f32 0.01, %v881_v54  ;;  %v656_v56 = vpop.f32.mrf.mxu0  ;;  %vm956_vm7 = vcmp.gt.f32.partialorder %v881_v54, 0.0 }
 0x180   : > { %v657_v58 = vadd.f32 %v2534_v45, %v656_v56 }
 0x181   : > { %v1020_v60 = vsel %vm956_vm7, %v881_v54, %v988_v55 }
 0x182   : > { %v737_v61 = vmul.f32 0.01, %v657_v58  ;;  %v1050_v62 = vpack.c.bf16 %v1020_v60, %v1019_v59  ;;  %vm705_vm9 = vcmp.gt.f32.partialorder %v657_v58, 0.0 }
 0x184   : > { %v883_v63 = vpop.f32.mrf.mxu1  ;;  %1146 = vmatmul.bf16.gmra.mxu2 %v1050_v62  ;;  %v769_v1 = vsel %vm705_vm9, %v657_v58, %v737_v61 }
 0x185   : > { %v790_v2 = vpack.c.bf16 %v769_v1, %v768_v0  ;;  %v884_v4 = vadd.f32 %v2571_v28, %v883_v63 }
 0x187   : > { %v659_v3 = vpop.f32.mrf.mxu0  ;;  %922 = vmatmul.bf16.gmra.mxu1 %v790_v2  ;;  %v989_v7 = vmul.f32 0.01, %v884_v4  ;;  %vm957_vm10 = vcmp.gt.f32.partialorder %v884_v4, 0.0 }
 0x188   : > { %v660_v5 = vadd.f32 %v2534_v45, %v659_v3 }
 0x189   : > { %v1021_v13 = vsel %vm957_vm10, %v884_v4, %v989_v7 }
 0x18a   : > { %v738_v11 = vmul.f32 0.01, %v660_v5  ;;  %vm706_vm12 = vcmp.gt.f32.partialorder %v660_v5, 0.0 }
 0x18c   : > { %v885_v6 = vpop.f32.mrf.mxu1  ;;  %v770_v18 = vsel %vm706_vm12, %v660_v5, %v738_v11 }
 0x18d   : > { %v886_v8 = vadd.f32 %v2571_v28, %v885_v6 }
 0x18f   : > { %v990_v9 = vmul.f32 0.01, %v886_v8  ;;  %v661_v10 = vpop.f32.mrf.mxu0  ;;  %vm958_vm11 = vcmp.gt.f32.partialorder %v886_v8, 0.0 }
 0x190   : > { %v662_v12 = vadd.f32 %v2534_v45, %v661_v10 }
 0x191   : > { %v1022_v14 = vsel %vm958_vm11, %v886_v8, %v990_v9 }
 0x192   : > { %v739_v15 = vmul.f32 0.01, %v662_v12  ;;  %v1051_v16 = vpack.c.bf16 %v1022_v14, %v1021_v13  ;;  %vm707_vm13 = vcmp.gt.f32.partialorder %v662_v12, 0.0  ;;  %v2042_v13 = vld [vmem:[#allocation10 + $0x38] sm:$0xff] }
 0x193   : > { %1402 = vmatpush.bf16.msra.mxu3 %v2042_v13 }
 0x194   : > { %v888_v17 = vpop.f32.mrf.mxu1  ;;  %1151 = vmatmul.bf16.gmra.mxu2 %v1051_v16  ;;  %v771_v19 = vsel %vm707_vm13, %v662_v12, %v739_v15  ;;  %v2041_v16 = vld [vmem:[#allocation10 + $0x30] sm:$0xff] }
 0x195   : > { %v791_v20 = vpack.c.bf16 %v771_v19, %v770_v18  ;;  %v889_v22 = vadd.f32 %v2571_v28, %v888_v17 }
 0x197   : > { %v664_v21 = vpop.f32.mrf.mxu0  ;;  %927 = vmatmul.bf16.gmra.mxu1 %v791_v20  ;;  %v991_v25 = vmul.f32 0.01, %v889_v22  ;;  %vm959_vm14 = vcmp.gt.f32.partialorder %v889_v22, 0.0  ;;  %1403 = vmatpush.bf16.msra.mxu3 %v2041_v16 }
 0x198   : > { %v665_v23 = vadd.f32 %v2534_v45, %v664_v21  ;;  %v2040_v21 = vld [vmem:[#allocation10 + $0x28] sm:$0xff] }
 0x199   : > { %v1023_v32 = vsel %vm959_vm14, %v889_v22, %v991_v25 }
 0x19a   : > { %v740_v30 = vmul.f32 0.01, %v665_v23  ;;  %vm708_vm0 = vcmp.gt.f32.partialorder %v665_v23, 0.0 }
 0x19b   : > { %1404 = vmatpush.bf16.msra.mxu3 %v2040_v21 }
 0x19c   : > { %v890_v24 = vpop.f32.mrf.mxu1  ;;  %v772_v37 = vsel %vm708_vm0, %v665_v23, %v740_v30 }
 0x19d   : > { %v891_v26 = vadd.f32 %v2571_v28, %v890_v24 }
 0x19f   : > { %v992_v27 = vmul.f32 0.01, %v891_v26  ;;  %v666_v29 = vpop.f32.mrf.mxu0  ;;  %vm960_vm15 = vcmp.gt.f32.partialorder %v891_v26, 0.0 }
 0x1a0   : > { %v667_v31 = vadd.f32 %v2534_v45, %v666_v29 }
 0x1a1   : > { %v1024_v33 = vsel %vm960_vm15, %v891_v26, %v992_v27 }
 0x1a2   : > { %vm709_vm1 = vcmp.gt.f32.partialorder %v667_v31, 0.0  ;;  %v741_v34 = vmul.f32 0.01, %v667_v31  ;;  %v1052_v35 = vpack.c.bf16 %v1024_v33, %v1023_v32 }
 0x1a4   : > { %v893_v36 = vpop.f32.mrf.mxu1  ;;  %1156 = vmatmul.bf16.gmra.mxu2 %v1052_v35  ;;  %v773_v38 = vsel %vm709_vm1, %v667_v31, %v741_v34  ;;  %v2039_v31 = vld [vmem:[#allocation10 + $0x20] sm:$0xff] }
 0x1a5   : > { %v792_v39 = vpack.c.bf16 %v773_v38, %v772_v37  ;;  %v894_v41 = vadd.f32 %v2571_v28, %v893_v36  ;;  %1405 = vmatpush.bf16.msra.mxu3 %v2039_v31  ;;  %v2038_v36 = vld [vmem:[#allocation10 + $0x18] sm:$0xff] }
 0x1a7   : > { %v669_v40 = vpop.f32.mrf.mxu0  ;;  %932 = vmatmul.bf16.gmra.mxu1 %v792_v39  ;;  %v993_v44 = vmul.f32 0.01, %v894_v41  ;;  %vm961_vm2 = vcmp.gt.f32.partialorder %v894_v41, 0.0 }
 0x1a8   : > { %v670_v42 = vadd.f32 %v2534_v45, %v669_v40 }
 0x1a9   : > { %v1025_v51 = vsel %vm961_vm2, %v894_v41, %v993_v44  ;;  %1406 = vmatpush.bf16.msra.mxu3 %v2038_v36  ;;  %v2036_v41 = vld [vmem:[#allocation10 + $0x8] sm:$0xff] }
 0x1aa   : > { %v742_v49 = vmul.f32 0.01, %v670_v42  ;;  %vm710_vm4 = vcmp.gt.f32.partialorder %v670_v42, 0.0 }
 0x1ac   : > { %v895_v43 = vpop.f32.mrf.mxu1  ;;  %v774_v56 = vsel %vm710_vm4, %v670_v42, %v742_v49 }
 0x1ad   : > { %v896_v46 = vadd.f32 %v2571_v28, %v895_v43 }
 0x1af   : > { %v994_v47 = vmul.f32 0.01, %v896_v46  ;;  %v671_v48 = vpop.f32.mrf.mxu0  ;;  %vm962_vm3 = vcmp.gt.f32.partialorder %v896_v46, 0.0 }
 0x1b0   : > { %v672_v50 = vadd.f32 %v2534_v45, %v671_v48 }
 0x1b1   : > { %v1026_v52 = vsel %vm962_vm3, %v896_v46, %v994_v47  ;;  %v2035_v47 = vld [vmem:[#allocation10] sm:$0xff] }
 0x1b2   : > { %vm711_vm5 = vcmp.gt.f32.partialorder %v672_v50, 0.0  ;;  %v743_v53 = vmul.f32 0.01, %v672_v50  ;;  %v1053_v54 = vpack.c.bf16 %v1026_v52, %v1025_v51 }
 0x1b4   : > { %v898_v55 = vpop.f32.mrf.mxu1  ;;  %1161 = vmatmul.bf16.gmra.mxu2 %v1053_v54  ;;  %v775_v57 = vsel %vm711_vm5, %v672_v50, %v743_v53 }
 0x1b5   : > { %v793_v58 = vpack.c.bf16 %v775_v57, %v774_v56  ;;  %v899_v60 = vadd.f32 %v2571_v28, %v898_v55 }
 0x1b7   : > { %v674_v59 = vpop.f32.mrf.mxu0  ;;  %937 = vmatmul.bf16.gmra.mxu1 %v793_v58  ;;  %v995_v63 = vmul.f32 0.01, %v899_v60  ;;  %vm963_vm6 = vcmp.gt.f32.partialorder %v899_v60, 0.0 }
 0x1b8   : > { %v675_v61 = vadd.f32 %v2534_v45, %v674_v59  ;;  %v2608_v59 = vld [vmem:[%s2854_s6] ss:$0 sm:$0xff] }
 0x1b9   : > { %v1027_v5 = vsel %vm963_vm6, %v899_v60, %v995_v63 }
 0x1ba   : > { %v744_v3 = vmul.f32 0.01, %v675_v61  ;;  %vm712_vm8 = vcmp.gt.f32.partialorder %v675_v61, 0.0 }
 0x1bc   : > { %v900_v62 = vpop.f32.mrf.mxu1  ;;  %v776_v10 = vsel %vm712_vm8, %v675_v61, %v744_v3 }
 0x1bd   : > { %v901_v0 = vadd.f32 %v2571_v28, %v900_v62 }
 0x1bf   : > { %v996_v1 = vmul.f32 0.01, %v901_v0  ;;  %v676_v2 = vpop.f32.mrf.mxu0  ;;  %vm964_vm7 = vcmp.gt.f32.partialorder %v901_v0, 0.0 }
 0x1c0   : > { %v677_v4 = vadd.f32 %v2534_v45, %v676_v2 }
 0x1c1   : > { %v1028_v6 = vsel %vm964_vm7, %v901_v0, %v996_v1 }
 0x1c2   : > { %vm713_vm9 = vcmp.gt.f32.partialorder %v677_v4, 0.0  ;;  %v745_v7 = vmul.f32 0.01, %v677_v4  ;;  %v1054_v8 = vpack.c.bf16 %v1028_v6, %v1027_v5 }
 0x1c4   : > { %v903_v9 = vpop.f32.mrf.mxu1  ;;  %1166 = vmatmul.bf16.gmra.mxu2 %v1054_v8  ;;  %v777_v11 = vsel %vm713_vm9, %v677_v4, %v745_v7 }
 0x1c5   : > { %v794_v12 = vpack.c.bf16 %v777_v11, %v776_v10  ;;  %v904_v15 = vadd.f32 %v2571_v28, %v903_v9 }
 0x1c7   : > { %v679_v14 = vpop.f32.mrf.mxu0  ;;  %942 = vmatmul.bf16.gmra.mxu1 %v794_v12  ;;  %v997_v19 = vmul.f32 0.01, %v904_v15  ;;  %vm965_vm10 = vcmp.gt.f32.partialorder %v904_v15, 0.0 }
 0x1c8   : > { %v680_v17 = vadd.f32 %v2534_v45, %v679_v14 }
 0x1c9   : > { %v1029_v26 = vsel %vm965_vm10, %v904_v15, %v997_v19 }
 0x1ca   : > { %v746_v24 = vmul.f32 0.01, %v680_v17  ;;  %vm714_vm12 = vcmp.gt.f32.partialorder %v680_v17, 0.0 }
 0x1cc   : > { %v905_v18 = vpop.f32.mrf.mxu1  ;;  %v778_v33 = vsel %vm714_vm12, %v680_v17, %v746_v24 }
 0x1cd   : > { %v906_v20 = vadd.f32 %v2571_v28, %v905_v18 }
 0x1cf   : > { %v998_v22 = vmul.f32 0.01, %v906_v20  ;;  %v681_v23 = vpop.f32.mrf.mxu0  ;;  %vm966_vm11 = vcmp.gt.f32.partialorder %v906_v20, 0.0 }
 0x1d0   : > { %v682_v25 = vadd.f32 %v2534_v45, %v681_v23  ;;  %v2037_v45 = vld [vmem:[#allocation10 + $0x10] sm:$0xff] }
 0x1d1   : > { %v1030_v27 = vsel %vm966_vm11, %v906_v20, %v998_v22  ;;  %1407 = vmatpush.bf16.msra.mxu3 %v2037_v45 }
 0x1d2   : > { %vm715_vm13 = vcmp.gt.f32.partialorder %v682_v25, 0.0  ;;  %v747_v29 = vmul.f32 0.01, %v682_v25  ;;  %v1055_v30 = vpack.c.bf16 %v1030_v27, %v1029_v26 }
 0x1d4   : > { %v908_v32 = vpop.f32.mrf.mxu1  ;;  %1171 = vmatmul.bf16.gmra.mxu2 %v1055_v30  ;;  %v779_v34 = vsel %vm715_vm13, %v682_v25, %v747_v29 }
 0x1d5   : > { %v795_v35 = vpack.c.bf16 %v779_v34, %v778_v33  ;;  %v909_v37 = vadd.f32 %v2571_v28, %v908_v32  ;;  %1408 = vmatpush.bf16.msra.mxu3 %v2036_v41 }
 0x1d7   : > { %947 = vmatmul.bf16.gmra.mxu1 %v795_v35  ;;  %v999_v39 = vmul.f32 0.01, %v909_v37  ;;  %vm967_vm14 = vcmp.gt.f32.partialorder %v909_v37, 0.0 }
 0x1d9   : > { %v1031_v43 = vsel %vm967_vm14, %v909_v37, %v999_v39  ;;  %1409 = vmatpush.bf16.msra.mxu3 %v2035_v47 }
 0x1dc   : > { %v910_v38 = vpop.f32.mrf.mxu1 }
 0x1dd   : > { %v911_v40 = vadd.f32 %v2571_v28, %v910_v38 }
 0x1df   : > { %v1000_v42 = vmul.f32 0.01, %v911_v40  ;;  %vm968_vm15 = vcmp.gt.f32.partialorder %v911_v40, 0.0 }
 0x1e1   : > { %v1032_v44 = vsel %vm968_vm15, %v911_v40, %v1000_v42 }
 0x1e2   : > { %v1056_v46 = vpack.c.bf16 %v1032_v44, %v1031_v43 }
 0x1e4   : > { %v913_v48 = vpop.f32.mrf.mxu1  ;;  %1176 = vmatmul.bf16.gmra.mxu2 %v1056_v46 }
 0x1e5   : > { %v914_v49 = vadd.f32 %v2571_v28, %v913_v48 }
 0x1e7   : > { %v1001_v51 = vmul.f32 0.01, %v914_v49  ;;  %vm969_vm0 = vcmp.gt.f32.partialorder %v914_v49, 0.0 }
 0x1e9   : > { %v1033_v54 = vsel %vm969_vm0, %v914_v49, %v1001_v51 }
 0x1ec   : > { %v915_v50 = vpop.f32.mrf.mxu1 }
 0x1ed   : > { %v916_v52 = vadd.f32 %v2571_v28, %v915_v50 }
 0x1ef   : > { %v1002_v53 = vmul.f32 0.01, %v916_v52  ;;  %vm970_vm1 = vcmp.gt.f32.partialorder %v916_v52, 0.0 }
 0x1f1   : > { %v1034_v55 = vsel %vm970_vm1, %v916_v52, %v1002_v53 }
 0x1f2   : > { %v1057_v56 = vpack.c.bf16 %v1034_v55, %v1033_v54 }
 0x1f4   : > { %v918_v57 = vpop.f32.mrf.mxu1  ;;  %1181 = vmatmul.bf16.gmra.mxu2 %v1057_v56 }
 0x1f5   : > { %v919_v60 = vadd.f32 %v2571_v28, %v918_v57 }
 0x1f7   : > { %v1142_v58 = vpop.f32.mrf.mxu2  ;;  %v1003_v63 = vmul.f32 0.01, %v919_v60  ;;  %vm971_vm2 = vcmp.gt.f32.partialorder %v919_v60, 0.0 }
 0x1f8   : > { %v1143_v61 = vadd.f32 %v2608_v59, %v1142_v58 }
 0x1f9   : > { %v1035_v5 = vsel %vm971_vm2, %v919_v60, %v1003_v63 }
 0x1fa   : > { %v1254_v3 = vmul.f32 0.01, %v1143_v61  ;;  %vm1222_vm4 = vcmp.gt.f32.partialorder %v1143_v61, 0.0 }
 0x1fc   : > { %v920_v62 = vpop.f32.mrf.mxu1  ;;  %v1286_v10 = vsel %vm1222_vm4, %v1143_v61, %v1254_v3 }
 0x1fd   : > { %v921_v0 = vadd.f32 %v2571_v28, %v920_v62 }
 0x1ff   : > { %v1004_v1 = vmul.f32 0.01, %v921_v0  ;;  %v1144_v2 = vpop.f32.mrf.mxu2  ;;  %vm972_vm3 = vcmp.gt.f32.partialorder %v921_v0, 0.0 }
 0x200   : > { %v1145_v4 = vadd.f32 %v2608_v59, %v1144_v2 }
 0x201   : > { %v1036_v6 = vsel %vm972_vm3, %v921_v0, %v1004_v1 }
 0x202   : > { %v1255_v7 = vmul.f32 0.01, %v1145_v4  ;;  %v1058_v8 = vpack.c.bf16 %v1036_v6, %v1035_v5  ;;  %vm1223_vm5 = vcmp.gt.f32.partialorder %v1145_v4, 0.0 }
 0x204   : > { %v923_v9 = vpop.f32.mrf.mxu1  ;;  %1186 = vmatmul.bf16.gmra.mxu2 %v1058_v8  ;;  %v1287_v11 = vsel %vm1223_vm5, %v1145_v4, %v1255_v7 }
 0x205   : > { %v1318_v12 = vpack.c.bf16 %v1287_v11, %v1286_v10  ;;  %v924_v14 = vadd.f32 %v2571_v28, %v923_v9 }
 0x207   : > { %v1147_v13 = vpop.f32.mrf.mxu2  ;;  %1410 = vmatmul.bf16.vlgmr.msra.gmra.mxu3 %v1318_v12  ;;  %v1005_v17 = vmul.f32 0.01, %v924_v14  ;;  %vm973_vm6 = vcmp.gt.f32.partialorder %v924_v14, 0.0 }
 0x208   : > { %v1148_v15 = vadd.f32 %v2608_v59, %v1147_v13 }
 0x209   : > { %v1037_v23 = vsel %vm973_vm6, %v924_v14, %v1005_v17 }
 0x20a   : > { %v1256_v21 = vmul.f32 0.01, %v1148_v15  ;;  %vm1224_vm8 = vcmp.gt.f32.partialorder %v1148_v15, 0.0 }
 0x20c   : > { %v925_v16 = vpop.f32.mrf.mxu1  ;;  %v1288_v29 = vsel %vm1224_vm8, %v1148_v15, %v1256_v21 }
 0x20d   : > { %v926_v18 = vadd.f32 %v2571_v28, %v925_v16 }
 0x20f   : > { %v1006_v19 = vmul.f32 0.01, %v926_v18  ;;  %v1149_v20 = vpop.f32.mrf.mxu2  ;;  %vm974_vm7 = vcmp.gt.f32.partialorder %v926_v18, 0.0 }
 0x210   : > { %v1150_v22 = vadd.f32 %v2608_v59, %v1149_v20 }
 0x211   : > { %v1038_v24 = vsel %vm974_vm7, %v926_v18, %v1006_v19 }
 0x212   : > { %v1257_v25 = vmul.f32 0.01, %v1150_v22  ;;  %v1059_v26 = vpack.c.bf16 %v1038_v24, %v1037_v23  ;;  %vm1225_vm9 = vcmp.gt.f32.partialorder %v1150_v22, 0.0 }
 0x214   : > { %v928_v27 = vpop.f32.mrf.mxu1  ;;  %1191 = vmatmul.bf16.gmra.mxu2 %v1059_v26  ;;  %v1289_v30 = vsel %vm1225_vm9, %v1150_v22, %v1257_v25 }
 0x215   : > { %v1319_v31 = vpack.c.bf16 %v1289_v30, %v1288_v29  ;;  %v929_v33 = vadd.f32 %v2571_v28, %v928_v27 }
 0x217   : > { %v1152_v32 = vpop.f32.mrf.mxu2  ;;  %1415 = vmatmul.bf16.gmra.mxu3 %v1319_v31  ;;  %v1007_v36 = vmul.f32 0.01, %v929_v33  ;;  %vm975_vm10 = vcmp.gt.f32.partialorder %v929_v33, 0.0 }
 0x218   : > { %v1153_v34 = vadd.f32 %v2608_v59, %v1152_v32 }
 0x219   : > { %v1039_v41 = vsel %vm975_vm10, %v929_v33, %v1007_v36 }
 0x21a   : > { %v1258_v39 = vmul.f32 0.01, %v1153_v34  ;;  %vm1226_vm12 = vcmp.gt.f32.partialorder %v1153_v34, 0.0 }
 0x21c   : > { %v930_v35 = vpop.f32.mrf.mxu1  ;;  %v1290_v47 = vsel %vm1226_vm12, %v1153_v34, %v1258_v39 }
 0x21d   : > { %v931_v37 = vadd.f32 %v2571_v28, %v930_v35 }
 0x21f   : > { %v1008_v45 = vmul.f32 0.01, %v931_v37  ;;  %v1154_v38 = vpop.f32.mrf.mxu2  ;;  %vm976_vm11 = vcmp.gt.f32.partialorder %v931_v37, 0.0 }
 0x220   : > { %v1155_v40 = vadd.f32 %v2608_v59, %v1154_v38 }
 0x221   : > { %v1040_v42 = vsel %vm976_vm11, %v931_v37, %v1008_v45 }
 0x222   : > { %v1259_v43 = vmul.f32 0.01, %v1155_v40  ;;  %v1060_v44 = vpack.c.bf16 %v1040_v42, %v1039_v41  ;;  %vm1227_vm13 = vcmp.gt.f32.partialorder %v1155_v40, 0.0 }
 0x224   : > { %v933_v46 = vpop.f32.mrf.mxu1  ;;  %1196 = vmatmul.bf16.gmra.mxu2 %v1060_v44  ;;  %v1291_v48 = vsel %vm1227_vm13, %v1155_v40, %v1259_v43 }
 0x225   : > { %v1320_v49 = vpack.c.bf16 %v1291_v48, %v1290_v47  ;;  %v934_v51 = vadd.f32 %v2571_v28, %v933_v46 }
 0x227   : > { %v1157_v50 = vpop.f32.mrf.mxu2  ;;  %1420 = vmatmul.bf16.gmra.mxu3 %v1320_v49  ;;  %v1009_v54 = vmul.f32 0.01, %v934_v51  ;;  %vm977_vm14 = vcmp.gt.f32.partialorder %v934_v51, 0.0 }
 0x228   : > { %v1158_v52 = vadd.f32 %v2608_v59, %v1157_v50 }
 0x229   : > { %v1041_v61 = vsel %vm977_vm14, %v934_v51, %v1009_v54 }
 0x22a   : > { %v1260_v58 = vmul.f32 0.01, %v1158_v52  ;;  %vm1228_vm0 = vcmp.gt.f32.partialorder %v1158_v52, 0.0 }
 0x22c   : > { %v935_v53 = vpop.f32.mrf.mxu1  ;;  %v1292_v2 = vsel %vm1228_vm0, %v1158_v52, %v1260_v58 }
 0x22d   : > { %v936_v55 = vadd.f32 %v2571_v28, %v935_v53 }
 0x22f   : > { %vm978_vm15 = vcmp.gt.f32.partialorder %v936_v55, 0.0  ;;  %v1010_v56 = vmul.f32 0.01, %v936_v55  ;;  %v1159_v57 = vpop.f32.mrf.mxu2 }
 0x230   : > { %v1160_v60 = vadd.f32 %v2608_v59, %v1159_v57 }
 0x231   : > { %v1042_v62 = vsel %vm978_vm15, %v936_v55, %v1010_v56 }
 0x232   : > { %v1261_v63 = vmul.f32 0.01, %v1160_v60  ;;  %v1061_v0 = vpack.c.bf16 %v1042_v62, %v1041_v61  ;;  %vm1229_vm1 = vcmp.gt.f32.partialorder %v1160_v60, 0.0 }
 0x234   : > { %v938_v1 = vpop.f32.mrf.mxu1  ;;  %1201 = vmatmul.bf16.gmra.mxu2 %v1061_v0  ;;  %v1293_v3 = vsel %vm1229_vm1, %v1160_v60, %v1261_v63 }
 0x235   : > { %v1321_v4 = vpack.c.bf16 %v1293_v3, %v1292_v2  ;;  %v939_v6 = vadd.f32 %v2571_v28, %v938_v1 }
 0x237   : > { %v1162_v5 = vpop.f32.mrf.mxu2  ;;  %1425 = vmatmul.bf16.gmra.mxu3 %v1321_v4  ;;  %v1011_v9 = vmul.f32 0.01, %v939_v6  ;;  %vm979_vm2 = vcmp.gt.f32.partialorder %v939_v6, 0.0 }
 0x238   : > { %v1163_v7 = vadd.f32 %v2608_v59, %v1162_v5 }
 0x239   : > { %v1043_v15 = vsel %vm979_vm2, %v939_v6, %v1011_v9 }
 0x23a   : > { %v1262_v13 = vmul.f32 0.01, %v1163_v7  ;;  %vm1230_vm4 = vcmp.gt.f32.partialorder %v1163_v7, 0.0 }
 0x23c   : > { %v940_v8 = vpop.f32.mrf.mxu1  ;;  %v1294_v20 = vsel %vm1230_vm4, %v1163_v7, %v1262_v13 }
 0x23d   : > { %v941_v10 = vadd.f32 %v2571_v28, %v940_v8 }
 0x23f   : > { %vm980_vm3 = vcmp.gt.f32.partialorder %v941_v10, 0.0  ;;  %v1012_v11 = vmul.f32 0.01, %v941_v10  ;;  %v1164_v12 = vpop.f32.mrf.mxu2 }
 0x240   : > { %v1165_v14 = vadd.f32 %v2608_v59, %v1164_v12 }
 0x241   : > { %v1044_v16 = vsel %vm980_vm3, %v941_v10, %v1012_v11 }
 0x242   : > { %v1263_v17 = vmul.f32 0.01, %v1165_v14  ;;  %v1062_v18 = vpack.c.bf16 %v1044_v16, %v1043_v15  ;;  %vm1231_vm5 = vcmp.gt.f32.partialorder %v1165_v14, 0.0 }
 0x244   : > { %v943_v19 = vpop.f32.mrf.mxu1  ;;  %1206 = vmatmul.bf16.gmra.mxu2 %v1062_v18  ;;  %v1295_v21 = vsel %vm1231_vm5, %v1165_v14, %v1263_v17  ;;  %v2645_v14 = vld [vmem:[%s2856_s8] ss:$0 sm:$0xff] }
 0x245   : > { %v1322_v22 = vpack.c.bf16 %v1295_v21, %v1294_v20  ;;  %v944_v24 = vadd.f32 %v2571_v28, %v943_v19  ;;  %v2652_v18 = vld [vmem:[%s2857_s9] ss:$0 sm:$0xff] }
 0x247   : > { %v1167_v23 = vpop.f32.mrf.mxu2  ;;  %1430 = vmatmul.bf16.gmra.mxu3 %v1322_v22  ;;  %v1013_v27 = vmul.f32 0.01, %v944_v24  ;;  %vm981_vm6 = vcmp.gt.f32.partialorder %v944_v24, 0.0 }
 0x248   : > { %v1168_v25 = vadd.f32 %v2608_v59, %v1167_v23 }
 0x249   : > { %v1045_v34 = vsel %vm981_vm6, %v944_v24, %v1013_v27 }
 0x24a   : > { %v1264_v32 = vmul.f32 0.01, %v1168_v25  ;;  %vm1232_vm8 = vcmp.gt.f32.partialorder %v1168_v25, 0.0 }
 0x24c   : > { %v945_v26 = vpop.f32.mrf.mxu1  ;;  %v1296_v38 = vsel %vm1232_vm8, %v1168_v25, %v1264_v32 }
 0x24d   : > { %v946_v29 = vadd.f32 %v2571_v28, %v945_v26 }
 0x24f   : > { %vm982_vm7 = vcmp.gt.f32.partialorder %v946_v29, 0.0  ;;  %v1014_v30 = vmul.f32 0.01, %v946_v29  ;;  %v1169_v31 = vpop.f32.mrf.mxu2 }
 0x250   : > { %v1170_v33 = vadd.f32 %v2608_v59, %v1169_v31 }
 0x251   : > { %v1046_v35 = vsel %vm982_vm7, %v946_v29, %v1014_v30 }
 0x252   : > { %v1265_v36 = vmul.f32 0.01, %v1170_v33  ;;  %v1063_v37 = vpack.c.bf16 %v1046_v35, %v1045_v34  ;;  %vm1233_vm9 = vcmp.gt.f32.partialorder %v1170_v33, 0.0 }
 0x254   : > { %v948_v45 = vpop.f32.mrf.mxu1  ;;  %1211 = vmatmul.bf16.gmra.mxu2 %v1063_v37  ;;  %v1297_v39 = vsel %vm1233_vm9, %v1170_v33, %v1265_v36 }
 0x255   : > { %v1323_v40 = vpack.c.bf16 %v1297_v39, %v1296_v38  ;;  %v949_v42 = vadd.f32 %v2571_v28, %v948_v45 }
 0x257   : > { %v1172_v41 = vpop.f32.mrf.mxu2  ;;  %1435 = vmatmul.bf16.gmra.mxu3 %v1323_v40  ;;  %v1015_v46 = vmul.f32 0.01, %v949_v42  ;;  %vm983_vm10 = vcmp.gt.f32.partialorder %v949_v42, 0.0 }
 0x258   : > { %v1173_v43 = vadd.f32 %v2608_v59, %v1172_v41 }
 0x259   : > { %v1047_v52 = vsel %vm983_vm10, %v949_v42, %v1015_v46 }
 0x25a   : > { %v1266_v50 = vmul.f32 0.01, %v1173_v43  ;;  %vm1234_vm12 = vcmp.gt.f32.partialorder %v1173_v43, 0.0 }
 0x25c   : > { %v950_v44 = vpop.f32.mrf.mxu1  ;;  %v1298_v56 = vsel %vm1234_vm12, %v1173_v43, %v1266_v50 }
 0x25d   : > { %v951_v47 = vadd.f32 %v2571_v28, %v950_v44 }
 0x25f   : > { %vm984_vm11 = vcmp.gt.f32.partialorder %v951_v47, 0.0  ;;  %v1016_v48 = vmul.f32 0.01, %v951_v47  ;;  %v1174_v49 = vpop.f32.mrf.mxu2 }
 0x260   : > { %v1175_v51 = vadd.f32 %v2608_v59, %v1174_v49 }
 0x261   : > { %v1048_v53 = vsel %vm984_vm11, %v951_v47, %v1016_v48 }
 0x262   : > { %v1267_v54 = vmul.f32 0.01, %v1175_v51  ;;  %v1064_v55 = vpack.c.bf16 %v1048_v53, %v1047_v52  ;;  %vm1235_vm13 = vcmp.gt.f32.partialorder %v1175_v51, 0.0 }
 0x264   : > { %1216 = vmatmul.bf16.gmra.mxu2 %v1064_v55  ;;  %v1299_v57 = vsel %vm1235_vm13, %v1175_v51, %v1267_v54 }
 0x265   : > { %v1324_v58 = vpack.c.bf16 %v1299_v57, %v1298_v56 }
 0x267   : > { %v1177_v60 = vpop.f32.mrf.mxu2  ;;  %1440 = vmatmul.bf16.gmra.mxu3 %v1324_v58 }
 0x268   : > { %v1178_v28 = vadd.f32 %v2608_v59, %v1177_v60 }
 0x26a   : > { %v1268_v62 = vmul.f32 0.01, %v1178_v28  ;;  %vm1236_vm14 = vcmp.gt.f32.partialorder %v1178_v28, 0.0 }
 0x26c   : > { %v1300_v1 = vsel %vm1236_vm14, %v1178_v28, %v1268_v62 }
 0x26f   : > { %v1179_v61 = vpop.f32.mrf.mxu2 }
 0x270   : > { %v1180_v63 = vadd.f32 %v2608_v59, %v1179_v61 }
 0x272   : > { %v1269_v0 = vmul.f32 0.01, %v1180_v63  ;;  %vm1237_vm15 = vcmp.gt.f32.partialorder %v1180_v63, 0.0 }
 0x274   : > { %v1301_v2 = vsel %vm1237_vm15, %v1180_v63, %v1269_v0 }
 0x275   : > { %v1325_v3 = vpack.c.bf16 %v1301_v2, %v1300_v1 }
 0x277   : > { %v1182_v4 = vpop.f32.mrf.mxu2  ;;  %1445 = vmatmul.bf16.gmra.mxu3 %v1325_v3 }
 0x278   : > { %v1183_v5 = vadd.f32 %v2608_v59, %v1182_v4 }
 0x27a   : > { %v1270_v7 = vmul.f32 0.01, %v1183_v5  ;;  %vm1238_vm0 = vcmp.gt.f32.partialorder %v1183_v5, 0.0 }
 0x27c   : > { %v1302_v10 = vsel %vm1238_vm0, %v1183_v5, %v1270_v7 }
 0x27f   : > { %v1184_v6 = vpop.f32.mrf.mxu2 }
 0x280   : > { %v1185_v8 = vadd.f32 %v2608_v59, %v1184_v6 }
 0x282   : > { %v1271_v9 = vmul.f32 0.01, %v1185_v8  ;;  %vm1239_vm1 = vcmp.gt.f32.partialorder %v1185_v8, 0.0 }
 0x284   : > { %v1303_v11 = vsel %vm1239_vm1, %v1185_v8, %v1271_v9 }
 0x285   : > { %v1326_v12 = vpack.c.bf16 %v1303_v11, %v1302_v10 }
 0x287   : > { %v1187_v13 = vpop.f32.mrf.mxu2  ;;  %1450 = vmatmul.bf16.gmra.mxu3 %v1326_v12 }
 0x288   : > { %v1188_v17 = vadd.f32 %v2608_v59, %v1187_v13 }
 0x28a   : > { %v1411_v15 = vpop.f32.mrf.mxu3  ;;  %v1272_v22 = vmul.f32 0.01, %v1188_v17  ;;  %vm1240_vm3 = vcmp.gt.f32.partialorder %v1188_v17, 0.0 }
 0x28b   : > { %v1412_v16 = vadd.f32 %v2645_v14, %v1411_v15 }
 0x28c   : > { %v1304_v29 = vsel %vm1240_vm3, %v1188_v17, %v1272_v22 }
 0x28d   : > { %v1523_v19 = vmul.f32 0.01, %v1412_v16  ;;  %vm1491_vm2 = vcmp.gt.f32.partialorder %v1412_v16, 0.0 }
 0x28f   : > { %v1189_v20 = vpop.f32.mrf.mxu2  ;;  %v1555_v21 = vsel %vm1491_vm2, %v1412_v16, %v1523_v19 }
 0x290   : > { %v1190_v23 = vadd.f32 %v2608_v59, %v1189_v20  ;;  %v1591_v24 = vmul.f32 %v2652_v18, %v1555_v21 }
 0x292   : > { %v1273_v25 = vmul.f32 0.01, %v1190_v23  ;;  %v1413_v26 = vpop.f32.mrf.mxu3  ;;  %1623 = vadd.xlane.f32.xlu0 %v1591_v24  ;;  %vm1241_vm4 = vcmp.gt.f32.partialorder %v1190_v23, 0.0 }
 0x293   : > { %v1414_v27 = vadd.f32 %v2645_v14, %v1413_v26 }
 0x294   : > { %v1305_v30 = vsel %vm1241_vm4, %v1190_v23, %v1273_v25 }
 0x295   : > { %v1524_v31 = vmul.f32 0.01, %v1414_v27  ;;  %v1327_v32 = vpack.c.bf16 %v1305_v30, %v1304_v29  ;;  %vm1492_vm5 = vcmp.gt.f32.partialorder %v1414_v27, 0.0 }
 0x297   : > { %v1192_v33 = vpop.f32.mrf.mxu2  ;;  %1455 = vmatmul.bf16.gmra.mxu3 %v1327_v32  ;;  %v1556_v34 = vsel %vm1492_vm5, %v1414_v27, %v1524_v31 }
 0x298   : > { %v1592_v35 = vmul.f32 %v2652_v18, %v1556_v34  ;;  %v1193_v45 = vadd.f32 %v2608_v59, %v1192_v33 }
 0x29a   : > { %v1416_v36 = vpop.f32.mrf.mxu3  ;;  %1625 = vadd.xlane.f32.xlu0 %v1592_v35  ;;  %v1274_v41 = vmul.f32 0.01, %v1193_v45  ;;  %vm1242_vm7 = vcmp.gt.f32.partialorder %v1193_v45, 0.0 }
 0x29b   : > { %v1417_v37 = vadd.f32 %v2645_v14, %v1416_v36 }
 0x29c   : > { %v1306_v48 = vsel %vm1242_vm7, %v1193_v45, %v1274_v41 }
 0x29d   : > { %v1525_v38 = vmul.f32 0.01, %v1417_v37  ;;  %vm1493_vm6 = vcmp.gt.f32.partialorder %v1417_v37, 0.0 }
 0x29f   : > { %v1194_v39 = vpop.f32.mrf.mxu2  ;;  %v1557_v40 = vsel %vm1493_vm6, %v1417_v37, %v1525_v38 }
 0x2a0   : > { %v1195_v42 = vadd.f32 %v2608_v59, %v1194_v39  ;;  %v1593_v43 = vmul.f32 %v2652_v18, %v1557_v40 }
 0x2a2   : > { %v1275_v44 = vmul.f32 0.01, %v1195_v42  ;;  %v1418_v46 = vpop.f32.mrf.mxu3  ;;  %1627 = vadd.xlane.f32.xlu1 %v1593_v43  ;;  %vm1243_vm8 = vcmp.gt.f32.partialorder %v1195_v42, 0.0 }
 0x2a3   : > { %v1419_v47 = vadd.f32 %v2645_v14, %v1418_v46 }
 0x2a4   : > { %v1307_v49 = vsel %vm1243_vm8, %v1195_v42, %v1275_v44 }
 0x2a5   : > { %v1526_v50 = vmul.f32 0.01, %v1419_v47  ;;  %v1328_v51 = vpack.c.bf16 %v1307_v49, %v1306_v48  ;;  %vm1494_vm9 = vcmp.gt.f32.partialorder %v1419_v47, 0.0 }
 0x2a7   : > { %v1197_v52 = vpop.f32.mrf.mxu2  ;;  %1460 = vmatmul.bf16.gmra.mxu3 %v1328_v51  ;;  %v1558_v53 = vsel %vm1494_vm9, %v1419_v47, %v1526_v50 }
 0x2a8   : > { %v1594_v54 = vmul.f32 %v2652_v18, %v1558_v53  ;;  %v1198_v57 = vadd.f32 %v2608_v59, %v1197_v52 }
 0x2aa   : > { %v1421_v55 = vpop.f32.mrf.mxu3  ;;  %1629 = vadd.xlane.f32.xlu1 %v1594_v54  ;;  %v1276_v61 = vmul.f32 0.01, %v1198_v57  ;;  %vm1244_vm11 = vcmp.gt.f32.partialorder %v1198_v57, 0.0 }
 0x2ab   : > { %v1422_v56 = vadd.f32 %v2645_v14, %v1421_v55 }
 0x2ac   : > { %v1308_v3 = vsel %vm1244_vm11, %v1198_v57, %v1276_v61 }
 0x2ad   : > { %v1527_v58 = vmul.f32 0.01, %v1422_v56  ;;  %vm1495_vm10 = vcmp.gt.f32.partialorder %v1422_v56, 0.0 }
 0x2af   : > { %v1199_v60 = vpop.f32.mrf.mxu2  ;;  %v1559_v28 = vsel %vm1495_vm10, %v1422_v56, %v1527_v58 }
 0x2b0   : > { %v1200_v62 = vadd.f32 %v2608_v59, %v1199_v60  ;;  %v1595_v63 = vmul.f32 %v2652_v18, %v1559_v28 }
 0x2b2   : > { %v1277_v0 = vmul.f32 0.01, %v1200_v62  ;;  %v1423_v1 = vpop.f32.mrf.mxu3  ;;  %1631 = vadd.xlane.f32.xlu2 %v1595_v63  ;;  %vm1245_vm12 = vcmp.gt.f32.partialorder %v1200_v62, 0.0 }
 0x2b3   : > { %v1424_v2 = vadd.f32 %v2645_v14, %v1423_v1 }
 0x2b4   : > { %v1309_v4 = vsel %vm1245_vm12, %v1200_v62, %v1277_v0 }
 0x2b5   : > { %v1528_v5 = vmul.f32 0.01, %v1424_v2  ;;  %v1329_v6 = vpack.c.bf16 %v1309_v4, %v1308_v3  ;;  %vm1496_vm13 = vcmp.gt.f32.partialorder %v1424_v2, 0.0 }
 0x2b7   : > { %v1202_v7 = vpop.f32.mrf.mxu2  ;;  %1465 = vmatmul.bf16.gmra.mxu3 %v1329_v6  ;;  %v1560_v8 = vsel %vm1496_vm13, %v1424_v2, %v1528_v5 }
 0x2b8   : > { %v1596_v9 = vmul.f32 %v2652_v18, %v1560_v8  ;;  %v1203_v12 = vadd.f32 %v2608_v59, %v1202_v7 }
 0x2ba   : > { %v1426_v10 = vpop.f32.mrf.mxu3  ;;  %1633 = vadd.xlane.f32.xlu2 %v1596_v9  ;;  %v1278_v17 = vmul.f32 0.01, %v1203_v12  ;;  %vm1246_vm15 = vcmp.gt.f32.partialorder %v1203_v12, 0.0 }
 0x2bb   : > { %v1427_v11 = vadd.f32 %v2645_v14, %v1426_v10 }
 0x2bc   : > { %v1310_v24 = vsel %vm1246_vm15, %v1203_v12, %v1278_v17  ;;  %vm1723_vm15 = vcmask 7168  }
 0x2bd   : > { %v1529_v13 = vmul.f32 0.01, %v1427_v11  ;;  %vm1497_vm14 = vcmp.gt.f32.partialorder %v1427_v11, 0.0 }
 0x2bf   : > { %v1204_v15 = vpop.f32.mrf.mxu2  ;;  %v1561_v16 = vsel %vm1497_vm14, %v1427_v11, %v1529_v13 }
 0x2c0   : > { %v1205_v19 = vadd.f32 %v2608_v59, %v1204_v15  ;;  %v1597_v20 = vmul.f32 %v2652_v18, %v1561_v16 }
 0x2c2   : > { %vm1247_vm0 = vcmp.gt.f32.partialorder %v1205_v19, 0.0  ;;  %v1279_v21 = vmul.f32 0.01, %v1205_v19  ;;  %v1428_v22 = vpop.f32.mrf.mxu3  ;;  %1635 = vadd.xlane.f32.xlu0 %v1597_v20 }
 0x2c3   : > { %v1429_v23 = vadd.f32 %v2645_v14, %v1428_v22 }
 0x2c4   : > { %v1311_v25 = vsel %vm1247_vm0, %v1205_v19, %v1279_v21 }
 0x2c5   : > { %v1530_v26 = vmul.f32 0.01, %v1429_v23  ;;  %v1330_v27 = vpack.c.bf16 %v1311_v25, %v1310_v24  ;;  %vm1498_vm1 = vcmp.gt.f32.partialorder %v1429_v23, 0.0 }
 0x2c7   : > { %v1207_v29 = vpop.f32.mrf.mxu2  ;;  %1470 = vmatmul.bf16.gmra.mxu3 %v1330_v27  ;;  %v1562_v30 = vsel %vm1498_vm1, %v1429_v23, %v1530_v26 }
 0x2c8   : > { %v1598_v31 = vmul.f32 %v2652_v18, %v1562_v30  ;;  %v1208_v34 = vadd.f32 %v2608_v59, %v1207_v29 }
 0x2ca   : > { %v1431_v32 = vpop.f32.mrf.mxu3  ;;  %1637 = vadd.xlane.f32.xlu1 %v1598_v31  ;;  %v1280_v45 = vmul.f32 0.01, %v1208_v34  ;;  %vm1248_vm3 = vcmp.gt.f32.partialorder %v1208_v34, 0.0 }
 0x2cb   : > { %v1432_v33 = vadd.f32 %v2645_v14, %v1431_v32  ;;  %v2698_v32 = vld [vmem:[#allocation2] ss:$0 sm:$0xff] }
 0x2cc   : > { %v1312_v43 = vsel %vm1248_vm3, %v1208_v34, %v1280_v45 }
 0x2cd   : > { %v1531_v35 = vmul.f32 0.01, %v1432_v33  ;;  %vm1499_vm2 = vcmp.gt.f32.partialorder %v1432_v33, 0.0 }
 0x2cf   : > { %v1209_v36 = vpop.f32.mrf.mxu2  ;;  %v1563_v37 = vsel %vm1499_vm2, %v1432_v33, %v1531_v35 }
 0x2d0   : > { %v1210_v38 = vadd.f32 %v2608_v59, %v1209_v36  ;;  %v1599_v39 = vmul.f32 %v2652_v18, %v1563_v37 }
 0x2d2   : > { %vm1249_vm4 = vcmp.gt.f32.partialorder %v1210_v38, 0.0  ;;  %v1281_v40 = vmul.f32 0.01, %v1210_v38  ;;  %v1433_v41 = vpop.f32.mrf.mxu3  ;;  %1639 = vadd.xlane.f32.xlu2 %v1599_v39 }
 0x2d3   : > { %v1434_v42 = vadd.f32 %v2645_v14, %v1433_v41 }
 0x2d4   : > { %v1313_v44 = vsel %vm1249_vm4, %v1210_v38, %v1281_v40 }
 0x2d5   : > { %v1532_v46 = vmul.f32 0.01, %v1434_v42  ;;  %v1331_v47 = vpack.c.bf16 %v1313_v44, %v1312_v43  ;;  %vm1500_vm5 = vcmp.gt.f32.partialorder %v1434_v42, 0.0 }
 0x2d7   : > { %v1212_v48 = vpop.f32.mrf.mxu2  ;;  %1475 = vmatmul.bf16.gmra.mxu3 %v1331_v47  ;;  %v1564_v49 = vsel %vm1500_vm5, %v1434_v42, %v1532_v46 }
 0x2d8   : > { %v1600_v50 = vmul.f32 %v2652_v18, %v1564_v49  ;;  %v1213_v53 = vadd.f32 %v2608_v59, %v1212_v48 }
 0x2da   : > { %v1436_v51 = vpop.f32.mrf.mxu3  ;;  %1641 = vadd.xlane.f32.xlu0 %v1600_v50  ;;  %v1282_v57 = vmul.f32 0.01, %v1213_v53  ;;  %vm1250_vm7 = vcmp.gt.f32.partialorder %v1213_v53, 0.0 }
 0x2db   : > { %v1437_v52 = vadd.f32 %v2645_v14, %v1436_v51 }
 0x2dc   : > { %v1314_v63 = vsel %vm1250_vm7, %v1213_v53, %v1282_v57 }
 0x2dd   : > { %v1533_v54 = vmul.f32 0.01, %v1437_v52  ;;  %vm1501_vm6 = vcmp.gt.f32.partialorder %v1437_v52, 0.0 }
 0x2df   : > { %v1214_v55 = vpop.f32.mrf.mxu2  ;;  %v1565_v56 = vsel %vm1501_vm6, %v1437_v52, %v1533_v54 }
 0x2e0   : > { %v1215_v58 = vadd.f32 %v2608_v59, %v1214_v55  ;;  %v1601_v60 = vmul.f32 %v2652_v18, %v1565_v56 }
 0x2e2   : > { %vm1251_vm8 = vcmp.gt.f32.partialorder %v1215_v58, 0.0  ;;  %v1283_v28 = vmul.f32 0.01, %v1215_v58  ;;  %v1438_v61 = vpop.f32.mrf.mxu3  ;;  %1643 = vadd.xlane.f32.xlu1 %v1601_v60 }
 0x2e3   : > { %v1439_v62 = vadd.f32 %v2645_v14, %v1438_v61 }
 0x2e4   : > { %v1315_v0 = vsel %vm1251_vm8, %v1215_v58, %v1283_v28 }
 0x2e5   : > { %v1534_v1 = vmul.f32 0.01, %v1439_v62  ;;  %v1332_v2 = vpack.c.bf16 %v1315_v0, %v1314_v63  ;;  %vm1502_vm9 = vcmp.gt.f32.partialorder %v1439_v62, 0.0 }
 0x2e7   : > { %v1217_v3 = vpop.f32.mrf.mxu2  ;;  %1480 = vmatmul.bf16.gmra.mxu3 %v1332_v2  ;;  %v1566_v4 = vsel %vm1502_vm9, %v1439_v62, %v1534_v1 }
 0x2e8   : > { %v1602_v5 = vmul.f32 %v2652_v18, %v1566_v4  ;;  %v1218_v8 = vadd.f32 %v2608_v59, %v1217_v3 }
 0x2ea   : > { %v1441_v6 = vpop.f32.mrf.mxu3  ;;  %1645 = vadd.xlane.f32.xlu2 %v1602_v5  ;;  %v1284_v12 = vmul.f32 0.01, %v1218_v8  ;;  %vm1252_vm11 = vcmp.gt.f32.partialorder %v1218_v8, 0.0 }
 0x2eb   : > { %v1442_v7 = vadd.f32 %v2645_v14, %v1441_v6 }
 0x2ec   : > { %v1316_v20 = vsel %vm1252_vm11, %v1218_v8, %v1284_v12 }
 0x2ed   : > { %v1535_v9 = vmul.f32 0.01, %v1442_v7  ;;  %vm1503_vm10 = vcmp.gt.f32.partialorder %v1442_v7, 0.0 }
 0x2ef   : > { %v1219_v10 = vpop.f32.mrf.mxu2  ;;  %v1567_v11 = vsel %vm1503_vm10, %v1442_v7, %v1535_v9 }
 0x2f0   : > { %v1220_v13 = vadd.f32 %v2608_v59, %v1219_v10  ;;  %v1603_v15 = vmul.f32 %v2652_v18, %v1567_v11 }
 0x2f2   : > { %vm1253_vm12 = vcmp.gt.f32.partialorder %v1220_v13, 0.0  ;;  %v1285_v16 = vmul.f32 0.01, %v1220_v13  ;;  %v1443_v17 = vpop.f32.mrf.mxu3  ;;  %1647 = vadd.xlane.f32.xlu0 %v1603_v15 }
 0x2f3   : > { %v1444_v19 = vadd.f32 %v2645_v14, %v1443_v17 }
 0x2f4   : > { %v1317_v21 = vsel %vm1253_vm12, %v1220_v13, %v1285_v16 }
 0x2f5   : > { %v1536_v22 = vmul.f32 0.01, %v1444_v19  ;;  %v1333_v23 = vpack.c.bf16 %v1317_v21, %v1316_v20  ;;  %vm1504_vm13 = vcmp.gt.f32.partialorder %v1444_v19, 0.0 }
 0x2f7   : > { %1485 = vmatmul.bf16.gmra.mxu3 %v1333_v23  ;;  %v1568_v24 = vsel %vm1504_vm13, %v1444_v19, %v1536_v22 }
 0x2f8   : > { %v1604_v59 = vmul.f32 %v2652_v18, %v1568_v24 }
 0x2fa   : > { %v1446_v25 = vpop.f32.mrf.mxu3  ;;  %1649 = vadd.xlane.f32.xlu1 %v1604_v59 }
 0x2fb   : > { %v1447_v26 = vadd.f32 %v2645_v14, %v1446_v25 }
 0x2fd   : > { %v1537_v27 = vmul.f32 0.01, %v1447_v26  ;;  %vm1505_vm14 = vcmp.gt.f32.partialorder %v1447_v26, 0.0 }
 0x2ff   : > { %v1569_v29 = vsel %vm1505_vm14, %v1447_v26, %v1537_v27 }
 0x300   : > { %v1605_v30 = vmul.f32 %v2652_v18, %v1569_v29 }
 0x302   : > { %v1448_v31 = vpop.f32.mrf.mxu3  ;;  %1651 = vadd.xlane.f32.xlu2 %v1605_v30 }
 0x303   : > { %v1449_v33 = vadd.f32 %v2645_v14, %v1448_v31 }
 0x305   : > { %v1538_v34 = vmul.f32 0.01, %v1449_v33  ;;  %v1624_v35 = vpop.xlane.xlu0 %1623  ;;  %vm1506_vm0 = vcmp.gt.f32.partialorder %v1449_v33, 0.0 }
 0x306   : > { %v1691_v36 = vadd.f32 %v2698_v32, %v1624_v35 }
 0x307   : > { %v1570_v37 = vsel %vm1506_vm0, %v1449_v33, %v1538_v34 }
 0x308   : > { %1724 = vst.msk [vmem:[%s2704_s14] sm:$0xff] %vm1723_vm15, %v1691_v36  ;;  %v1606_v45 = vmul.f32 %v2652_v18, %v1570_v37 }
 0x30a   : > { %v1451_v38 = vpop.f32.mrf.mxu3  ;;  %1653 = vadd.xlane.f32.xlu0 %v1606_v45 }
 0x30b   : > { %v1452_v39 = vadd.f32 %v2645_v14, %v1451_v38 }
 0x30d   : > { %v1539_v40 = vmul.f32 0.01, %v1452_v39  ;;  %v1626_v41 = vpop.xlane.xlu0 %1625  ;;  %vm1507_vm1 = vcmp.gt.f32.partialorder %v1452_v39, 0.0 }
 0x30e   : > { %v1692_v42 = vadd.f32 %v2698_v32, %v1626_v41 }
 0x30f   : > { %v1571_v43 = vsel %vm1507_vm1, %v1452_v39, %v1539_v40 }
 0x310   : > { %1725 = vst.msk [vmem:[%s2704_s14 + $0x8] sm:$0xff] %vm1723_vm15, %v1692_v42  ;;  %v1607_v44 = vmul.f32 %v2652_v18, %v1571_v43 }
 0x312   : > { %v1453_v46 = vpop.f32.mrf.mxu3  ;;  %1655 = vadd.xlane.f32.xlu1 %v1607_v44 }
 0x313   : > { %v1454_v47 = vadd.f32 %v2645_v14, %v1453_v46 }
 0x315   : > { %v1540_v48 = vmul.f32 0.01, %v1454_v47  ;;  %v1628_v49 = vpop.xlane.xlu1 %1627  ;;  %vm1508_vm2 = vcmp.gt.f32.partialorder %v1454_v47, 0.0 }
 0x316   : > { %v1693_v50 = vadd.f32 %v2698_v32, %v1628_v49 }
 0x317   : > { %v1572_v51 = vsel %vm1508_vm2, %v1454_v47, %v1540_v48 }
 0x318   : > { %1726 = vst.msk [vmem:[%s2704_s14 + $0x10] sm:$0xff] %vm1723_vm15, %v1693_v50  ;;  %v1608_v52 = vmul.f32 %v2652_v18, %v1572_v51 }
 0x31a   : > { %v1456_v53 = vpop.f32.mrf.mxu3  ;;  %1657 = vadd.xlane.f32.xlu2 %v1608_v52 }
 0x31b   : > { %v1457_v54 = vadd.f32 %v2645_v14, %v1456_v53 }
 0x31d   : > { %v1541_v55 = vmul.f32 0.01, %v1457_v54  ;;  %v1630_v56 = vpop.xlane.xlu1 %1629  ;;  %vm1509_vm3 = vcmp.gt.f32.partialorder %v1457_v54, 0.0 }
 0x31e   : > { %v1694_v57 = vadd.f32 %v2698_v32, %v1630_v56 }
 0x31f   : > { %v1573_v58 = vsel %vm1509_vm3, %v1457_v54, %v1541_v55 }
 0x320   : > { %1727 = vst.msk [vmem:[%s2704_s14 + $0x18] sm:$0xff] %vm1723_vm15, %v1694_v57  ;;  %v1609_v60 = vmul.f32 %v2652_v18, %v1573_v58 }
 0x322   : > { %v1458_v28 = vpop.f32.mrf.mxu3  ;;  %1659 = vadd.xlane.f32.xlu0 %v1609_v60 }
 0x323   : > { %v1459_v61 = vadd.f32 %v2645_v14, %v1458_v28 }
 0x325   : > { %v1542_v62 = vmul.f32 0.01, %v1459_v61  ;;  %v1632_v63 = vpop.xlane.xlu2 %1631  ;;  %vm1510_vm4 = vcmp.gt.f32.partialorder %v1459_v61, 0.0 }
 0x326   : > { %v1695_v0 = vadd.f32 %v2698_v32, %v1632_v63 }
 0x327   : > { %v1574_v1 = vsel %vm1510_vm4, %v1459_v61, %v1542_v62 }
 0x328   : > { %1728 = vst.msk [vmem:[%s2704_s14 + $0x20] sm:$0xff] %vm1723_vm15, %v1695_v0  ;;  %v1610_v2 = vmul.f32 %v2652_v18, %v1574_v1 }
 0x32a   : > { %v1461_v3 = vpop.f32.mrf.mxu3  ;;  %1661 = vadd.xlane.f32.xlu1 %v1610_v2 }
 0x32b   : > { %v1462_v4 = vadd.f32 %v2645_v14, %v1461_v3 }
 0x32d   : > { %v1543_v5 = vmul.f32 0.01, %v1462_v4  ;;  %v1634_v6 = vpop.xlane.xlu2 %1633  ;;  %vm1511_vm5 = vcmp.gt.f32.partialorder %v1462_v4, 0.0 }
 0x32e   : > { %v1696_v7 = vadd.f32 %v2698_v32, %v1634_v6 }
 0x32f   : > { %v1575_v8 = vsel %vm1511_vm5, %v1462_v4, %v1543_v5 }
 0x330   : > { %1729 = vst.msk [vmem:[%s2704_s14 + $0x28] sm:$0xff] %vm1723_vm15, %v1696_v7  ;;  %v1611_v9 = vmul.f32 %v2652_v18, %v1575_v8 }
 0x332   : > { %v1463_v10 = vpop.f32.mrf.mxu3  ;;  %1663 = vadd.xlane.f32.xlu2 %v1611_v9 }
 0x333   : > { %v1464_v11 = vadd.f32 %v2645_v14, %v1463_v10 }
 0x335   : > { %v1544_v12 = vmul.f32 0.01, %v1464_v11  ;;  %v1636_v13 = vpop.xlane.xlu0 %1635  ;;  %vm1512_vm6 = vcmp.gt.f32.partialorder %v1464_v11, 0.0 }
 0x336   : > { %v1697_v15 = vadd.f32 %v2698_v32, %v1636_v13 }
 0x337   : > { %v1576_v16 = vsel %vm1512_vm6, %v1464_v11, %v1544_v12 }
 0x338   : > { %1730 = vst.msk [vmem:[%s2704_s14 + $0x30] sm:$0xff] %vm1723_vm15, %v1697_v15  ;;  %v1612_v17 = vmul.f32 %v2652_v18, %v1576_v16 }
 0x33a   : > { %v1466_v19 = vpop.f32.mrf.mxu3  ;;  %1665 = vadd.xlane.f32.xlu0 %v1612_v17 }
 0x33b   : > { %v1467_v20 = vadd.f32 %v2645_v14, %v1466_v19 }
 0x33d   : > { %v1545_v21 = vmul.f32 0.01, %v1467_v20  ;;  %v1638_v22 = vpop.xlane.xlu1 %1637  ;;  %vm1513_vm7 = vcmp.gt.f32.partialorder %v1467_v20, 0.0 }
 0x33e   : > { %v1698_v23 = vadd.f32 %v2698_v32, %v1638_v22 }
 0x33f   : > { %v1577_v24 = vsel %vm1513_vm7, %v1467_v20, %v1545_v21 }
 0x340   : > { %1731 = vst.msk [vmem:[%s2704_s14 + $0x38] sm:$0xff] %vm1723_vm15, %v1698_v23  ;;  %v1613_v59 = vmul.f32 %v2652_v18, %v1577_v24 }
 0x342   : > { %v1468_v25 = vpop.f32.mrf.mxu3  ;;  %1667 = vadd.xlane.f32.xlu1 %v1613_v59 }
 0x343   : > { %v1469_v26 = vadd.f32 %v2645_v14, %v1468_v25 }
 0x345   : > { %v1546_v27 = vmul.f32 0.01, %v1469_v26  ;;  %v1640_v29 = vpop.xlane.xlu2 %1639  ;;  %vm1514_vm8 = vcmp.gt.f32.partialorder %v1469_v26, 0.0 }
 0x346   : > { %v1699_v30 = vadd.f32 %v2698_v32, %v1640_v29 }
 0x347   : > { %v1578_v31 = vsel %vm1514_vm8, %v1469_v26, %v1546_v27 }
 0x348   : > { %1732 = vst.msk [vmem:[%s2704_s14 + $0x40] sm:$0xff] %vm1723_vm15, %v1699_v30  ;;  %v1614_v33 = vmul.f32 %v2652_v18, %v1578_v31 }
 0x34a   : > { %v1471_v34 = vpop.f32.mrf.mxu3  ;;  %1669 = vadd.xlane.f32.xlu2 %v1614_v33 }
 0x34b   : > { %v1472_v35 = vadd.f32 %v2645_v14, %v1471_v34 }
 0x34d   : > { %v1547_v36 = vmul.f32 0.01, %v1472_v35  ;;  %v1642_v37 = vpop.xlane.xlu0 %1641  ;;  %vm1515_vm9 = vcmp.gt.f32.partialorder %v1472_v35, 0.0 }
 0x34e   : > { %v1700_v45 = vadd.f32 %v2698_v32, %v1642_v37 }
 0x34f   : > { %v1579_v38 = vsel %vm1515_vm9, %v1472_v35, %v1547_v36 }
 0x350   : > { %1733 = vst.msk [vmem:[%s2704_s14 + $0x48] sm:$0xff] %vm1723_vm15, %v1700_v45  ;;  %v1615_v39 = vmul.f32 %v2652_v18, %v1579_v38 }
 0x352   : > { %v1473_v40 = vpop.f32.mrf.mxu3  ;;  %1671 = vadd.xlane.f32.xlu0 %v1615_v39 }
 0x353   : > { %v1474_v41 = vadd.f32 %v2645_v14, %v1473_v40 }
 0x355   : > { %v1548_v42 = vmul.f32 0.01, %v1474_v41  ;;  %v1644_v43 = vpop.xlane.xlu1 %1643  ;;  %vm1516_vm10 = vcmp.gt.f32.partialorder %v1474_v41, 0.0 }
 0x356   : > { %v1701_v44 = vadd.f32 %v2698_v32, %v1644_v43 }
 0x357   : > { %v1580_v46 = vsel %vm1516_vm10, %v1474_v41, %v1548_v42 }
 0x358   : > { %1734 = vst.msk [vmem:[%s2704_s14 + $0x50] sm:$0xff] %vm1723_vm15, %v1701_v44  ;;  %v1616_v47 = vmul.f32 %v2652_v18, %v1580_v46 }
 0x35a   : > { %v1476_v48 = vpop.f32.mrf.mxu3  ;;  %1673 = vadd.xlane.f32.xlu1 %v1616_v47 }
 0x35b   : > { %v1477_v49 = vadd.f32 %v2645_v14, %v1476_v48 }
 0x35d   : > { %v1549_v50 = vmul.f32 0.01, %v1477_v49  ;;  %v1646_v51 = vpop.xlane.xlu2 %1645  ;;  %vm1517_vm11 = vcmp.gt.f32.partialorder %v1477_v49, 0.0 }
 0x35e   : > { %v1702_v52 = vadd.f32 %v2698_v32, %v1646_v51 }
 0x35f   : > { %v1581_v53 = vsel %vm1517_vm11, %v1477_v49, %v1549_v50 }
 0x360   : > { %1735 = vst.msk [vmem:[%s2704_s14 + $0x58] sm:$0xff] %vm1723_vm15, %v1702_v52  ;;  %v1617_v54 = vmul.f32 %v2652_v18, %v1581_v53 }
 0x362   : > { %v1478_v55 = vpop.f32.mrf.mxu3  ;;  %1675 = vadd.xlane.f32.xlu2 %v1617_v54 }
 0x363   : > { %v1479_v56 = vadd.f32 %v2645_v14, %v1478_v55 }
 0x365   : > { %v1550_v57 = vmul.f32 0.01, %v1479_v56  ;;  %v1648_v58 = vpop.xlane.xlu0 %1647  ;;  %vm1518_vm12 = vcmp.gt.f32.partialorder %v1479_v56, 0.0 }
 0x366   : > { %v1703_v60 = vadd.f32 %v2698_v32, %v1648_v58 }
 0x367   : > { %v1582_v28 = vsel %vm1518_vm12, %v1479_v56, %v1550_v57 }
 0x368   : > { %1736 = vst.msk [vmem:[%s2704_s14 + $0x60] sm:$0xff] %vm1723_vm15, %v1703_v60  ;;  %v1618_v61 = vmul.f32 %v2652_v18, %v1582_v28 }
 0x36a   : > { %v1481_v62 = vpop.f32.mrf.mxu3  ;;  %1677 = vadd.xlane.f32.xlu0 %v1618_v61 }
 0x36b   : > { %v1482_v63 = vadd.f32 %v2645_v14, %v1481_v62 }
 0x36d   : > { %v1551_v0 = vmul.f32 0.01, %v1482_v63  ;;  %v1650_v1 = vpop.xlane.xlu1 %1649  ;;  %vm1519_vm13 = vcmp.gt.f32.partialorder %v1482_v63, 0.0 }
 0x36e   : > { %v1704_v2 = vadd.f32 %v2698_v32, %v1650_v1 }
 0x36f   : > { %v1583_v3 = vsel %vm1519_vm13, %v1482_v63, %v1551_v0 }
 0x370   : > { %1737 = vst.msk [vmem:[%s2704_s14 + $0x68] sm:$0xff] %vm1723_vm15, %v1704_v2  ;;  %v1619_v4 = vmul.f32 %v2652_v18, %v1583_v3 }
 0x372   : > { %v1483_v5 = vpop.f32.mrf.mxu3  ;;  %1679 = vadd.xlane.f32.xlu1 %v1619_v4 }
 0x373   : > { %v1484_v6 = vadd.f32 %v2645_v14, %v1483_v5 }
 0x375   : > { %v1552_v7 = vmul.f32 0.01, %v1484_v6  ;;  %v1652_v8 = vpop.xlane.xlu2 %1651  ;;  %vm1520_vm14 = vcmp.gt.f32.partialorder %v1484_v6, 0.0 }
 0x376   : > { %v1705_v9 = vadd.f32 %v2698_v32, %v1652_v8 }
 0x377   : > { %v1584_v10 = vsel %vm1520_vm14, %v1484_v6, %v1552_v7 }
 0x378   : > { %1738 = vst.msk [vmem:[%s2704_s14 + $0x70] sm:$0xff] %vm1723_vm15, %v1705_v9  ;;  %v1620_v11 = vmul.f32 %v2652_v18, %v1584_v10 }
 0x37a   : > { %v1486_v12 = vpop.f32.mrf.mxu3  ;;  %1681 = vadd.xlane.f32.xlu2 %v1620_v11 }
 0x37b   : > { %v1487_v13 = vadd.f32 %v2645_v14, %v1486_v12 }
 0x37d   : > { %v1553_v15 = vmul.f32 0.01, %v1487_v13  ;;  %v1654_v16 = vpop.xlane.xlu0 %1653  ;;  %vm1521_vm0 = vcmp.gt.f32.partialorder %v1487_v13, 0.0 }
 0x37e   : > { %v1706_v17 = vadd.f32 %v2698_v32, %v1654_v16 }
 0x37f   : > { %v1585_v19 = vsel %vm1521_vm0, %v1487_v13, %v1553_v15 }
 0x380   : > { %1739 = vst.msk [vmem:[%s2704_s14 + $0x78] sm:$0xff] %vm1723_vm15, %v1706_v17  ;;  %v1621_v20 = vmul.f32 %v2652_v18, %v1585_v19 }
 0x382   : > { %v1488_v21 = vpop.f32.mrf.mxu3  ;;  %1683 = vadd.xlane.f32.xlu0 %v1621_v20 }
 0x383   : > { %v1489_v22 = vadd.f32 %v2645_v14, %v1488_v21 }
 0x385   : > { %v1554_v23 = vmul.f32 0.01, %v1489_v22  ;;  %v1656_v24 = vpop.xlane.xlu1 %1655  ;;  %vm1522_vm1 = vcmp.gt.f32.partialorder %v1489_v22, 0.0 }
 0x386   : > { %v1707_v59 = vadd.f32 %v2698_v32, %v1656_v24 }
 0x387   : > { %v1586_v25 = vsel %vm1522_vm1, %v1489_v22, %v1554_v23 }
 0x388   : > { %1740 = vst.msk [vmem:[%s2704_s14 + $0x80] sm:$0xff] %vm1723_vm15, %v1707_v59  ;;  %v1622_v26 = vmul.f32 %v2652_v18, %v1586_v25 }
 0x38a   : > { %1685 = vadd.xlane.f32.xlu1 %v1622_v26 }
 0x38d   : > { %v1658_v27 = vpop.xlane.xlu2 %1657 }
 0x38e   : > { %v1708_v29 = vadd.f32 %v2698_v32, %v1658_v27 }
 0x390   : > { %1741 = vst.msk [vmem:[%s2704_s14 + $0x88] sm:$0xff] %vm1723_vm15, %v1708_v29 }
 0x395   : > { %v1660_v14 = vpop.xlane.xlu0 %1659 }
 0x396   : > { %v1709_v30 = vadd.f32 %v2698_v32, %v1660_v14 }
 0x398   : > { %1742 = vst.msk [vmem:[%s2704_s14 + $0x90] sm:$0xff] %vm1723_vm15, %v1709_v30 }
 0x39d   : > { %v1662_v31 = vpop.xlane.xlu1 %1661 }
 0x39e   : > { %v1710_v33 = vadd.f32 %v2698_v32, %v1662_v31 }
 0x3a0   : > { %1743 = vst.msk [vmem:[%s2704_s14 + $0x98] sm:$0xff] %vm1723_vm15, %v1710_v33 }
 0x3a5   : > { %v1664_v18 = vpop.xlane.xlu2 %1663 }
 0x3a6   : > { %v1711_v34 = vadd.f32 %v2698_v32, %v1664_v18 }
 0x3a8   : > { %1744 = vst.msk [vmem:[%s2704_s14 + $0xa0] sm:$0xff] %vm1723_vm15, %v1711_v34 }
 0x3ad   : > { %v1666_v35 = vpop.xlane.xlu0 %1665 }
 0x3ae   : > { %v1712_v36 = vadd.f32 %v2698_v32, %v1666_v35 }
 0x3b0   : > { %1745 = vst.msk [vmem:[%s2704_s14 + $0xa8] sm:$0xff] %vm1723_vm15, %v1712_v36 }
 0x3b5   : > { %v1668_v37 = vpop.xlane.xlu1 %1667 }
 0x3b6   : > { %v1713_v45 = vadd.f32 %v2698_v32, %v1668_v37 }
 0x3b8   : > { %1746 = vst.msk [vmem:[%s2704_s14 + $0xb0] sm:$0xff] %vm1723_vm15, %v1713_v45 }
 0x3bd   : > { %v1670_v38 = vpop.xlane.xlu2 %1669 }
 0x3be   : > { %v1714_v39 = vadd.f32 %v2698_v32, %v1670_v38 }
 0x3c0   : > { %1747 = vst.msk [vmem:[%s2704_s14 + $0xb8] sm:$0xff] %vm1723_vm15, %v1714_v39 }
 0x3c5   : > { %v1672_v40 = vpop.xlane.xlu0 %1671 }
 0x3c6   : > { %v1715_v41 = vadd.f32 %v2698_v32, %v1672_v40 }
 0x3c8   : > { %1748 = vst.msk [vmem:[%s2704_s14 + $0xc0] sm:$0xff] %vm1723_vm15, %v1715_v41 }
 0x3cd   : > { %v1674_v42 = vpop.xlane.xlu1 %1673 }
 0x3ce   : > { %v1716_v43 = vadd.f32 %v2698_v32, %v1674_v42 }
 0x3d0   : > { %1749 = vst.msk [vmem:[%s2704_s14 + $0xc8] sm:$0xff] %vm1723_vm15, %v1716_v43 }
 0x3d5   : > { %v1676_v44 = vpop.xlane.xlu2 %1675 }
 0x3d6   : > { %v1717_v46 = vadd.f32 %v2698_v32, %v1676_v44 }
 0x3d8   : > { %1750 = vst.msk [vmem:[%s2704_s14 + $0xd0] sm:$0xff] %vm1723_vm15, %v1717_v46 }
 0x3dd   : > { %v1678_v47 = vpop.xlane.xlu0 %1677 }
 0x3de   : > { %v1718_v48 = vadd.f32 %v2698_v32, %v1678_v47 }
 0x3e0   : > { %1751 = vst.msk [vmem:[%s2704_s14 + $0xd8] sm:$0xff] %vm1723_vm15, %v1718_v48 }
 0x3e5   : > { %v1680_v49 = vpop.xlane.xlu1 %1679 }
 0x3e6   : > { %v1719_v50 = vadd.f32 %v2698_v32, %v1680_v49 }
 0x3e8   : > { %1752 = vst.msk [vmem:[%s2704_s14 + $0xe0] sm:$0xff] %vm1723_vm15, %v1719_v50 }
 0x3ed   : > { %v1682_v51 = vpop.xlane.xlu2 %1681 }
 0x3ee   : > { %v1720_v52 = vadd.f32 %v2698_v32, %v1682_v51 }
 0x3f0   : > { %1753 = vst.msk [vmem:[%s2704_s14 + $0xe8] sm:$0xff] %vm1723_vm15, %v1720_v52 }
 0x3f5   : > { %v1684_v53 = vpop.xlane.xlu0 %1683 }
 0x3f6   : > { %v1721_v54 = vadd.f32 %v2698_v32, %v1684_v53 }
 0x3f8   : > { %1754 = vst.msk [vmem:[%s2704_s14 + $0xf0] sm:$0xff] %vm1723_vm15, %v1721_v54 }
 0x3fd   : > { %v1686_v55 = vpop.xlane.xlu1 %1685 }
 0x3fe   : > { %v1722_v56 = vadd.f32 %v2698_v32, %v1686_v55 }
 0x400   : > { %1755 = vst.msk [vmem:[%s2704_s14 + $0xf8] sm:$0xff] %vm1723_vm15, %v1722_v56 }
 0x401 PF: > { %p25_p4 = scmp.ge.s32.totalorder %s2465_s15, 4   ;;  %s2873_s19 = smov %s2317_s20 }
 0x402   : > { %s2874_s20 = smov %s2321_s21  ;;  %s2875_s21 = smov %s2476_s30 }
 0x403   : > { %s2876_s22 = smov %s2465_s15  ;;  %27 = sbr.rel (!%p25_p4) target bundleno = 9 (0x9), region = 120 }
 0x408   :  { %1778 = vsyncpa [#allocation4], 1 }
 0x409   :  { %1780 = vsyncpa [#allocation4 + $0x1], 1 }
 0x40a   :  { %1781 = vsyncpa [#allocation6], 1 }
 0x40b   :  { %1782 = vsyncpa [#allocation9], 1 }

</bundles_post_ra>
